<compile_context>
chip_gen: v5e
topology: v5e:2x2
jax: 0.10.0
libtpu: 0.0.40
codegen_flags: <defaults>
</compile_context>

<pallas_src>
import collections

import numpy as np
import jax
import jax.numpy as jnp
from jax.experimental import pallas as pl
from jax.experimental.pallas import tpu as pltpu

Genotype = collections.namedtuple(
    "Genotype", "normal normal_concat reduce reduce_concat")

GENOTYPE = Genotype(
    normal=[("sep_conv_3x3", 0), ("skip_connect", 1),
            ("sep_conv_3x3", 1), ("avg_pool_3x3", 0),
            ("skip_connect", 2), ("max_pool_3x3", 1),
            ("sep_conv_3x3", 2), ("skip_connect", 3)],
    normal_concat=[2, 3, 4, 5],
    reduce=[("max_pool_3x3", 0), ("skip_connect", 1),
            ("max_pool_3x3", 0), ("skip_connect", 2),
            ("max_pool_3x3", 0), ("skip_connect", 2),
            ("max_pool_3x3", 0), ("skip_connect", 2)],
    reduce_concat=[2, 3, 4, 5],
)

_BN_EPS = 1e-5


# ----------------------------------------------------------------------------
# Fused cell kernel (one pallas_call, grid over batch)
# ----------------------------------------------------------------------------

def _make_cell_kernel(op_names, indices, concat, sep_slot, C, H, W):
    """Builds the fused kernel for one batch element in (C, H*W) layout."""
    HW = H * W

    def kernel(s0_ref, s1_ref, w0_ref, b0_ref, w1_ref, b1_ref,
               sepw_ref, sepb_ref, invc_ref, wcol_ref, out_ref):
        invc = invc_ref[...]                                   # (1, HW)
        # Per-lane column index (broadcast once; reused by every halo mask).
        wc = jnp.broadcast_to(wcol_ref[...], (C, HW))          # (C, HW)
        ok_r = wc <= (W - 2)     # tap (., +1) valid (w+1 in range)
        ok_l = wc >= 1           # tap (., -1) valid (w-1 in range)

        def padded_lanes(x, fill):
            # One lane-padded copy per op input; 3x3 taps become static slices.
            pad = jnp.full((C, W + 1), fill, jnp.float32)
            return jnp.concatenate([pad, x, pad], axis=1)      # (C, HW+2W+2)

        def tap(xp, dy, dx, fill):
            # value[l] = x[l + dy*W + dx] with `fill` outside the image.
            off = (W + 1) + dy * W + dx
            t = xp[:, off:off + HW]
            if dx == 1:
                t = jnp.where(ok_r, t, fill)
            elif dx == -1:
                t = jnp.where(ok_l, t, fill)
            return t

        def preprocess(x_ref, w_ref, b_ref):
            # ReLU -> 1x1 conv -> folded BN (scale folded into w, shift added).
            x = jnp.maximum(x_ref[0], 0.0)                     # (Cin, HW)
            y = jnp.dot(w_ref[...], x, preferred_element_type=jnp.float32)
            return y + b_ref[...]                              # (C, HW)

        def sep_half(x, slot):
            # ReLU -> (depthwise3x3 * pointwise1x1 * BNscale) as ONE im2col
            # matmul -> BN shift.
            xp = padded_lanes(jnp.maximum(x, 0.0), 0.0)
            xcol = jnp.concatenate(
                [tap(xp, dy, dx, 0.0)
                 for dy in (-1, 0, 1) for dx in (-1, 0, 1)], axis=0)  # (9C, HW)
            y = jnp.dot(sepw_ref[slot], xcol,
                        preferred_element_type=jnp.float32)           # (C, HW)
            return y + sepb_ref[slot]

        def sep_conv(x, pos):
            base = 2 * sep_slot[pos]
            return sep_half(sep_half(x, base), base + 1)

        def max_pool(x):
            # MaxPool2d(3, stride=1, padding=1): padding never wins (-inf).
            xp = padded_lanes(x, -jnp.inf)
            m = x
            for dy in (-1, 0, 1):
                for dx in (-1, 0, 1):
                    if dy == 0 and dx == 0:
                        continue
                    m = jnp.maximum(m, tap(xp, dy, dx, -jnp.inf))
            return m

        def avg_pool(x):
            # AvgPool2d(3, stride=1, padding=1, count_include_pad=False).
            xp = padded_lanes(x, 0.0)
            acc = x
            for dy in (-1, 0, 1):
                for dx in (-1, 0, 1):
                    if dy == 0 and dx == 0:
                        continue
                    acc = acc + tap(xp, dy, dx, 0.0)
            return acc * invc

        def apply_op(name, pos, x):
            if name == "skip_connect":
                return x
            if name == "avg_pool_3x3":
                return avg_pool(x)
            if name == "max_pool_3x3":
                return max_pool(x)
            if name == "sep_conv_3x3":
                return sep_conv(x, pos)
            raise ValueError("unsupported op: " + name)

        s0 = preprocess(s0_ref, w0_ref, b0_ref)
        s1 = preprocess(s1_ref, w1_ref, b1_ref)
        states = [s0, s1]
        for i in range(len(op_names) // 2):
            h1 = apply_op(op_names[2 * i], 2 * i, states[indices[2 * i]])
            h2 = apply_op(op_names[2 * i + 1], 2 * i + 1,
                          states[indices[2 * i + 1]])
            states.append(h1 + h2)
        for k, idx in enumerate(concat):
            out_ref[0, k, :, :] = states[idx]

    return kernel


def _pool_constants(H, W):
    # inv count for avg-pool (count_include_pad=False) and per-lane w index.
    cnt = np.zeros((H, W), np.float32)
    onesp = np.pad(np.ones((H, W), np.float32), ((1, 1), (1, 1)))
    for dy in range(3):
        for dx in range(3):
            cnt += onesp[dy:dy + H, dx:dx + W]
    invc = (1.0 / cnt).reshape(1, H * W).astype(np.float32)
    wcol = np.tile(np.arange(W, dtype=np.float32), H).reshape(1, H * W)
    return jnp.asarray(invc), jnp.asarray(wcol)


# ----------------------------------------------------------------------------
# Deterministic parameter initialization + host-side folding
# ----------------------------------------------------------------------------

def _fold_bn(key, c):
    kg, kb, km, kv = jax.random.split(key, 4)
    gamma = 1.0 + 0.1 * jax.random.normal(kg, (c,), jnp.float32)
    beta = 0.1 * jax.random.normal(kb, (c,), jnp.float32)
    mean = 0.1 * jax.random.normal(km, (c,), jnp.float32)
    var = jax.random.uniform(kv, (c,), jnp.float32, 0.5, 1.5)
    scale = gamma / jnp.sqrt(var + _BN_EPS)
    shift = beta - mean * scale
    return scale, shift


def _init_relu_conv_bn(key, cin, cout):
    kw, kbn = jax.random.split(key)
    w = 0.3 * jax.random.normal(kw, (cin, cout), jnp.float32)
    scale, shift = _fold_bn(kbn, cout)
    packed_w = (w.T * scale[:, None]).astype(jnp.float32)     # (cout, cin)
    packed_b = shift.reshape(cout, 1)
    raw = {"w": w, "scale": scale, "shift": shift}
    return packed_w, packed_b, raw


def _init_sep_conv(key, C):
    keys = jax.random.split(key, 6)
    packed_w, packed_b, raw = [], [], {}
    for half in (1, 2):
        kd, kp, kb = keys[3 * (half - 1):3 * (half - 1) + 3]
        dw = 0.3 * jax.random.normal(kd, (3, 3, C), jnp.float32)   # depthwise
        pw = 0.3 * jax.random.normal(kp, (C, C), jnp.float32)      # (cin, cout)
        scale, shift = _fold_bn(kb, C)
        # W_eff[ky,kx,ci,co] = dw[ky,kx,ci] * pw[ci,co] * bn_scale[co]
        weff = (dw[:, :, :, None] * pw[None, None, :, :]) * \
            scale[None, None, None, :]
        # -> (co, tap*C + ci), tap = ky*3 + kx  (matches in-kernel im2col order)
        wpack = jnp.transpose(weff.reshape(9, C, C), (2, 0, 1)).reshape(C, 9 * C)
        packed_w.append(wpack)
        packed_b.append(shift.reshape(C, 1))
        raw["dw%d" % half] = dw
        raw["pw%d" % half] = pw
        raw["scale%d" % half] = scale
        raw["shift%d" % half] = shift
    return packed_w, packed_b, raw


# ----------------------------------------------------------------------------
# Cell (JAX/Pallas mirror of the PyTorch module's forward)
# ----------------------------------------------------------------------------

class Cell:
    def __init__(self, key, genotype, C_prev_prev, C_prev, C,
                 reduction, reduction_prev):
        # TODO(synk): reduction cells (FactorizedReduce / stride-2 ops) are not
        # implemented; this covers reduction=False and reduction_prev=False.
        assert not reduction and not reduction_prev
        self._C = C
        op_names, indices = zip(*genotype.normal)
        self._op_names = op_names
        self._indices = indices
        self._concat = list(genotype.normal_concat)
        self._steps = len(op_names) // 2

        k0, k1, kops = jax.random.split(key, 3)
        self._w0, self._b0, raw0 = _init_relu_conv_bn(k0, C_prev_prev, C)
        self._w1, self._b1, raw1 = _init_relu_conv_bn(k1, C_prev, C)

        sep_positions = [p for p, n in enumerate(op_names)
                         if n == "sep_conv_3x3"]
        self._sep_slot = {p: j for j, p in enumerate(sep_positions)}
        op_keys = jax.random.split(kops, max(1, len(op_names)))
        ws, bs, raw_sep = [], [], {}
        for p in sep_positions:
            w_pair, b_pair, raw = _init_sep_conv(op_keys[p], C)
            ws.extend(w_pair)
            bs.extend(b_pair)
            raw_sep[p] = raw
        if ws:
            self._sep_w = jnp.stack(ws)            # (2*n_sep, C, 9C)
            self._sep_b = jnp.stack(bs)            # (2*n_sep, C, 1)
        else:                                      # genotype without sep convs
            self._sep_w = jnp.zeros((2, C, 9 * C), jnp.float32)
            self._sep_b = jnp.zeros((2, C, 1), jnp.float32)
        self._raw = {"pre0": raw0, "pre1": raw1, "sep": raw_sep}

    # -- fused Pallas forward -------------------------------------------------
    def __call__(self, s0_nchw, s1_nchw):
        N, C_pp, H, W = s0_nchw.shape
        C_p = s1_nchw.shape[1]
        C = self._C
        HW = H * W
        n_cat = len(self._concat)
        n_w = self._sep_w.shape[0]

        s0 = s0_nchw.reshape(N, C_pp, HW)          # pure reshape (NCHW layout)
        s1 = s1_nchw.reshape(N, C_p, HW)
        invc, wcol = _pool_constants(H, W)

        kernel = _make_cell_kernel(self._op_names, self._indices, self._concat,
                                   self._sep_slot, C, H, W)

        out = pl.pallas_call(
            kernel,
            out_shape=jax.ShapeDtypeStruct((N, n_cat, C, HW), jnp.float32),
            grid=(N,),
            in_specs=[
                pl.BlockSpec((1, C_pp, HW), lambda b: (b, 0, 0)),
                pl.BlockSpec((1, C_p, HW), lambda b: (b, 0, 0)),
                pl.BlockSpec((C, C_pp), lambda b: (0, 0)),
                pl.BlockSpec((C, 1), lambda b: (0, 0)),
                pl.BlockSpec((C, C_p), lambda b: (0, 0)),
                pl.BlockSpec((C, 1), lambda b: (0, 0)),
                pl.BlockSpec((n_w, C, 9 * C), lambda b: (0, 0, 0)),
                pl.BlockSpec((n_w, C, 1), lambda b: (0, 0, 0)),
                pl.BlockSpec((1, HW), lambda b: (0, 0)),
                pl.BlockSpec((1, HW), lambda b: (0, 0)),
            ],
            out_specs=pl.BlockSpec((1, n_cat, C, HW), lambda b: (b, 0, 0, 0)),
            compiler_params=pltpu.CompilerParams(
                dimension_semantics=("parallel",)),
        )(s0, s1, self._w0, self._b0, self._w1, self._b1,
          self._sep_w, self._sep_b, invc, wcol)

        # (N, n_cat, C, H, W) -> (N, n_cat*C, H, W): matches torch.cat(dim=1).
        return out.reshape(N, n_cat * C, H, W)

    # -- pure-JAX reference (unfolded params) for correctness checking --------
    def reference(self, s0_nchw, s1_nchw):
        hp = jax.lax.Precision.HIGHEST

        def rcb(x, p):
            x = jnp.maximum(x, 0.0)
            y = jnp.einsum("nchw,co->nohw", x, p["w"], precision=hp)
            return (y * p["scale"][None, :, None, None]
                    + p["shift"][None, :, None, None])

        def sep_half(x, dw, pw, scale, shift):
            xr = jnp.maximum(x, 0.0)
            xp = jnp.pad(xr, ((0, 0), (0, 0), (1, 1), (1, 1)))
            n_, c_, h_, w_ = x.shape
            acc = jnp.zeros_like(x)
            for dy in range(3):
                for dx in range(3):
                    acc = acc + (xp[:, :, dy:dy + h_, dx:dx + w_]
                                 * dw[dy, dx][None, :, None, None])
            y = jnp.einsum("nchw,co->nohw", acc, pw, precision=hp)
            return (y * scale[None, :, None, None]
                    + shift[None, :, None, None])

        def sep_conv(x, raw):
            y = sep_half(x, raw["dw1"], raw["pw1"], raw["scale1"], raw["shift1"])
            return sep_half(y, raw["dw2"], raw["pw2"], raw["scale2"],
                            raw["shift2"])

        def avg_pool(x):
            n_, c_, h_, w_ = x.shape
            xp = jnp.pad(x, ((0, 0), (0, 0), (1, 1), (1, 1)))
            onesp = jnp.pad(jnp.ones((h_, w_), jnp.float32), ((1, 1), (1, 1)))
            acc = jnp.zeros_like(x)
            cnt = jnp.zeros((h_, w_), jnp.float32)
            for dy in range(3):
                for dx in range(3):
                    acc = acc + xp[:, :, dy:dy + h_, dx:dx + w_]
                    cnt = cnt + onesp[dy:dy + h_, dx:dx + w_]
            return acc / cnt[None, None]

        def max_pool(x):
            n_, c_, h_, w_ = x.shape
            xp = jnp.pad(x, ((0, 0), (0, 0), (1, 1), (1, 1)),
                         constant_values=-jnp.inf)
            m = xp[:, :, 1:1 + h_, 1:1 + w_]
            for dy in range(3):
                for dx in range(3):
                    if dy == 1 and dx == 1:
                        continue
                    m = jnp.maximum(m, xp[:, :, dy:dy + h_, dx:dx + w_])
            return m

        def apply_op(name, pos, x):
            if name == "skip_connect":
                return x
            if name == "avg_pool_3x3":
                return avg_pool(x)
            if name == "max_pool_3x3":
                return max_pool(x)
            return sep_conv(x, self._raw["sep"][pos])

        s0 = rcb(s0_nchw, self._raw["pre0"])
        s1 = rcb(s1_nchw, self._raw["pre1"])
        states = [s0, s1]
        for i in range(self._steps):
            h1 = apply_op(self._op_names[2 * i], 2 * i,
                          states[self._indices[2 * i]])
            h2 = apply_op(self._op_names[2 * i + 1], 2 * i + 1,
                          states[self._indices[2 * i + 1]])
            states.append(h1 + h2)
        return jnp.concatenate([states[i] for i in self._concat], axis=1)


if __name__ == "__main__":
    key = jax.random.PRNGKey(0)
    kparams, k0, k1 = jax.random.split(key, 3)
    N, C_pp, C_p, C, H, W = 2, 8, 8, 8, 16, 16

    cell = Cell(kparams, GENOTYPE, C_pp, C_p, C,
                reduction=False, reduction_prev=False)

    s0 = jax.random.normal(k0, (N, C_pp, H, W), jnp.float32)
    s1 = jax.random.normal(k1, (N, C_p, H, W), jnp.float32)

    out = jax.jit(cell.__call__)(s0, s1)
    out = jax.block_until_ready(out)

    assert out.shape == (N, len(GENOTYPE.normal_concat) * C, H, W)
    assert bool(jnp.all(jnp.isfinite(out)))

    ref = cell.reference(s0, s1)
    max_err = float(jnp.max(jnp.abs(out - ref)))
    assert bool(jnp.allclose(out, ref, atol=3e-2, rtol=3e-2)), \
        "mismatch vs reference, max_err=%g" % max_err

    print("KERNEL_OK")
</pallas_src>

<mosaic_0001>
module attributes {stable_mosaic.version = 11 : i64} {
  func.func @kernel(%arg0: i32, %arg1: memref<1x8x256xf32, #tpu.memory_space<vmem>>, %arg2: memref<1x8x256xf32, #tpu.memory_space<vmem>>, %arg3: memref<8x8xf32, #tpu.memory_space<vmem>>, %arg4: memref<8x1xf32, #tpu.memory_space<vmem>>, %arg5: memref<8x8xf32, #tpu.memory_space<vmem>>, %arg6: memref<8x1xf32, #tpu.memory_space<vmem>>, %arg7: memref<6x8x72xf32, #tpu.memory_space<vmem>>, %arg8: memref<6x8x1xf32, #tpu.memory_space<vmem>>, %arg9: memref<1x256xf32, #tpu.memory_space<vmem>>, %arg10: memref<1x256xf32, #tpu.memory_space<vmem>>, %arg11: memref<1x4x8x256xf32, #tpu.memory_space<vmem>>) attributes {dimension_semantics = [#tpu.dimension_semantics<parallel>], iteration_bounds = array<i64: 2>, scalar_prefetch = 0 : i64, scratch_operands = 0 : i64, tpu.core_type = #tpu.core_type<tc>, window_params = [{transform_indices = @transform_0, window_bounds = array<i64: 1, 8, 256>}, {transform_indices = @transform_1, window_bounds = array<i64: 1, 8, 256>}, {pipeline_mode = #tpu.pipeline_mode<synchronous>, transform_indices = @transform_2, window_bounds = array<i64: 8, 8>}, {pipeline_mode = #tpu.pipeline_mode<synchronous>, transform_indices = @transform_3, window_bounds = array<i64: 8, 1>}, {pipeline_mode = #tpu.pipeline_mode<synchronous>, transform_indices = @transform_4, window_bounds = array<i64: 8, 8>}, {pipeline_mode = #tpu.pipeline_mode<synchronous>, transform_indices = @transform_5, window_bounds = array<i64: 8, 1>}, {pipeline_mode = #tpu.pipeline_mode<synchronous>, transform_indices = @transform_6, window_bounds = array<i64: 6, 8, 72>}, {pipeline_mode = #tpu.pipeline_mode<synchronous>, transform_indices = @transform_7, window_bounds = array<i64: 6, 8, 1>}, {pipeline_mode = #tpu.pipeline_mode<synchronous>, transform_indices = @transform_8, window_bounds = array<i64: 1, 256>}, {pipeline_mode = #tpu.pipeline_mode<synchronous>, transform_indices = @transform_9, window_bounds = array<i64: 1, 256>}, {transform_indices = @transform_10, window_bounds = array<i64: 1, 4, 8, 256>}]} {
    %c0 = arith.constant 0 : index
    %c0_0 = arith.constant 0 : index
    %0 = vector.load %arg9[%c0, %c0_0] : memref<1x256xf32, #tpu.memory_space<vmem>>, vector<1x256xf32>
    %c0_1 = arith.constant 0 : index
    %c0_2 = arith.constant 0 : index
    %1 = vector.load %arg10[%c0_1, %c0_2] : memref<1x256xf32, #tpu.memory_space<vmem>>, vector<1x256xf32>
    %2 = vector.shape_cast %1 : vector<1x256xf32> to vector<1x256xf32>
    %3 = vector.broadcast %2 : vector<1x256xf32> to vector<8x256xf32>
    %cst = arith.constant 1.400000e+01 : f32
    %4 = vector.broadcast %cst : f32 to vector<8x256xf32>
    %5 = arith.cmpf ole, %3, %4 : vector<8x256xf32>
    %cst_3 = arith.constant 1.000000e+00 : f32
    %6 = vector.broadcast %cst_3 : f32 to vector<8x256xf32>
    %7 = arith.cmpf oge, %3, %6 : vector<8x256xf32>
    %c0_4 = arith.constant 0 : index
    %c0_5 = arith.constant 0 : index
    %c0_6 = arith.constant 0 : index
    %8 = vector.load %arg1[%c0_4, %c0_5, %c0_6] : memref<1x8x256xf32, #tpu.memory_space<vmem>>, vector<1x8x256xf32>
    %9 = vector.shape_cast %8 : vector<1x8x256xf32> to vector<8x256xf32>
    %cst_7 = arith.constant 0.000000e+00 : f32
    %10 = vector.broadcast %cst_7 : f32 to vector<8x256xf32>
    %11 = arith.maximumf %9, %10 : vector<8x256xf32>
    %c0_8 = arith.constant 0 : index
    %c0_9 = arith.constant 0 : index
    %12 = vector.load %arg3[%c0_8, %c0_9] : memref<8x8xf32, #tpu.memory_space<vmem>>, vector<8x8xf32>
    %cst_10 = arith.constant dense<0.000000e+00> : vector<8x256xf32>
    %13 = tpu.matmul %12, %11, %cst_10 {dimension_numbers = #tpu.dot_dimension_numbers<[1], [0], [0], [1], [0, 0, 1, 1], [], []>} : vector<8x8xf32>, vector<8x256xf32>, vector<8x256xf32> -> vector<8x256xf32>
    %c0_11 = arith.constant 0 : index
    %c0_12 = arith.constant 0 : index
    %14 = vector.load %arg4[%c0_11, %c0_12] : memref<8x1xf32, #tpu.memory_space<vmem>>, vector<8x1xf32>
    %15 = vector.broadcast %14 : vector<8x1xf32> to vector<8x256xf32>
    %16 = arith.addf %13, %15 : vector<8x256xf32>
    %c0_13 = arith.constant 0 : index
    %c0_14 = arith.constant 0 : index
    %c0_15 = arith.constant 0 : index
    %17 = vector.load %arg2[%c0_13, %c0_14, %c0_15] : memref<1x8x256xf32, #tpu.memory_space<vmem>>, vector<1x8x256xf32>
    %18 = vector.shape_cast %17 : vector<1x8x256xf32> to vector<8x256xf32>
    %cst_16 = arith.constant 0.000000e+00 : f32
    %19 = vector.broadcast %cst_16 : f32 to vector<8x256xf32>
    %20 = arith.maximumf %18, %19 : vector<8x256xf32>
    %c0_17 = arith.constant 0 : index
    %c0_18 = arith.constant 0 : index
    %21 = vector.load %arg5[%c0_17, %c0_18] : memref<8x8xf32, #tpu.memory_space<vmem>>, vector<8x8xf32>
    %cst_19 = arith.constant dense<0.000000e+00> : vector<8x256xf32>
    %22 = tpu.matmul %21, %20, %cst_19 {dimension_numbers = #tpu.dot_dimension_numbers<[1], [0], [0], [1], [0, 0, 1, 1], [], []>} : vector<8x8xf32>, vector<8x256xf32>, vector<8x256xf32> -> vector<8x256xf32>
    %c0_20 = arith.constant 0 : index
    %c0_21 = arith.constant 0 : index
    %23 = vector.load %arg6[%c0_20, %c0_21] : memref<8x1xf32, #tpu.memory_space<vmem>>, vector<8x1xf32>
    %24 = vector.broadcast %23 : vector<8x1xf32> to vector<8x256xf32>
    %25 = arith.addf %22, %24 : vector<8x256xf32>
    %cst_22 = arith.constant 0.000000e+00 : f32
    %26 = vector.broadcast %cst_22 : f32 to vector<8x256xf32>
    %27 = arith.maximumf %16, %26 : vector<8x256xf32>
    %cst_23 = arith.constant 0.000000e+00 : f32
    %28 = vector.broadcast %cst_23 : f32 to vector<8x17xf32>
    %29 = tpu.concatenate %28, %27, %28 in 1 : vector<8x17xf32>, vector<8x256xf32>, vector<8x17xf32> -> vector<8x290xf32>
    %30 = vector.extract_strided_slice %29 {offsets = [0, 0], sizes = [8, 256], strides = [1, 1]} : vector<8x290xf32> to vector<8x256xf32>
    %cst_24 = arith.constant 0.000000e+00 : f32
    %31 = vector.broadcast %cst_24 : f32 to vector<8x256xf32>
    %32 = arith.select %7, %30, %31 : vector<8x256xi1>, vector<8x256xf32>
    %33 = vector.extract_strided_slice %29 {offsets = [0, 1], sizes = [8, 256], strides = [1, 1]} : vector<8x290xf32> to vector<8x256xf32>
    %34 = vector.extract_strided_slice %29 {offsets = [0, 2], sizes = [8, 256], strides = [1, 1]} : vector<8x290xf32> to vector<8x256xf32>
    %cst_25 = arith.constant 0.000000e+00 : f32
    %35 = vector.broadcast %cst_25 : f32 to vector<8x256xf32>
    %36 = arith.select %5, %34, %35 : vector<8x256xi1>, vector<8x256xf32>
    %37 = vector.extract_strided_slice %29 {offsets = [0, 16], sizes = [8, 256], strides = [1, 1]} : vector<8x290xf32> to vector<8x256xf32>
    %cst_26 = arith.constant 0.000000e+00 : f32
    %38 = vector.broadcast %cst_26 : f32 to vector<8x256xf32>
    %39 = arith.select %7, %37, %38 : vector<8x256xi1>, vector<8x256xf32>
    %40 = vector.extract_strided_slice %29 {offsets = [0, 17], sizes = [8, 256], strides = [1, 1]} : vector<8x290xf32> to vector<8x256xf32>
    %41 = vector.extract_strided_slice %29 {offsets = [0, 18], sizes = [8, 256], strides = [1, 1]} : vector<8x290xf32> to vector<8x256xf32>
    %cst_27 = arith.constant 0.000000e+00 : f32
    %42 = vector.broadcast %cst_27 : f32 to vector<8x256xf32>
    %43 = arith.select %5, %41, %42 : vector<8x256xi1>, vector<8x256xf32>
    %44 = vector.extract_strided_slice %29 {offsets = [0, 32], sizes = [8, 256], strides = [1, 1]} : vector<8x290xf32> to vector<8x256xf32>
    %cst_28 = arith.constant 0.000000e+00 : f32
    %45 = vector.broadcast %cst_28 : f32 to vector<8x256xf32>
    %46 = arith.select %7, %44, %45 : vector<8x256xi1>, vector<8x256xf32>
    %47 = vector.extract_strided_slice %29 {offsets = [0, 33], sizes = [8, 256], strides = [1, 1]} : vector<8x290xf32> to vector<8x256xf32>
    %48 = vector.extract_strided_slice %29 {offsets = [0, 34], sizes = [8, 256], strides = [1, 1]} : vector<8x290xf32> to vector<8x256xf32>
    %cst_29 = arith.constant 0.000000e+00 : f32
    %49 = vector.broadcast %cst_29 : f32 to vector<8x256xf32>
    %50 = arith.select %5, %48, %49 : vector<8x256xi1>, vector<8x256xf32>
    %51 = tpu.concatenate %32, %33, %36, %39, %40, %43, %46, %47, %50 in 0 : vector<8x256xf32>, vector<8x256xf32>, vector<8x256xf32>, vector<8x256xf32>, vector<8x256xf32>, vector<8x256xf32>, vector<8x256xf32>, vector<8x256xf32>, vector<8x256xf32> -> vector<72x256xf32>
    %c0_30 = arith.constant 0 : index
    %c0_31 = arith.constant 0 : index
    %c0_32 = arith.constant 0 : index
    %52 = vector.load %arg7[%c0_30, %c0_31, %c0_32] : memref<6x8x72xf32, #tpu.memory_space<vmem>>, vector<1x8x72xf32>
    %53 = vector.shape_cast %52 : vector<1x8x72xf32> to vector<8x72xf32>
    %cst_33 = arith.constant dense<0.000000e+00> : vector<8x256xf32>
    %54 = tpu.matmul %53, %51, %cst_33 {dimension_numbers = #tpu.dot_dimension_numbers<[1], [0], [0], [1], [0, 0, 1, 1], [], []>} : vector<8x72xf32>, vector<72x256xf32>, vector<8x256xf32> -> vector<8x256xf32>
    %c0_34 = arith.constant 0 : index
    %c0_35 = arith.constant 0 : index
    %c0_36 = arith.constant 0 : index
    %55 = vector.load %arg8[%c0_34, %c0_35, %c0_36] : memref<6x8x1xf32, #tpu.memory_space<vmem>>, vector<1x8x1xf32>
    %56 = vector.shape_cast %55 : vector<1x8x1xf32> to vector<8x1xf32>
    %57 = vector.broadcast %56 : vector<8x1xf32> to vector<8x256xf32>
    %58 = arith.addf %54, %57 : vector<8x256xf32>
    %cst_37 = arith.constant 0.000000e+00 : f32
    %59 = vector.broadcast %cst_37 : f32 to vector<8x256xf32>
    %60 = arith.maximumf %58, %59 : vector<8x256xf32>
    %cst_38 = arith.constant 0.000000e+00 : f32
    %61 = vector.broadcast %cst_38 : f32 to vector<8x17xf32>
    %62 = tpu.concatenate %61, %60, %61 in 1 : vector<8x17xf32>, vector<8x256xf32>, vector<8x17xf32> -> vector<8x290xf32>
    %63 = vector.extract_strided_slice %62 {offsets = [0, 0], sizes = [8, 256], strides = [1, 1]} : vector<8x290xf32> to vector<8x256xf32>
    %cst_39 = arith.constant 0.000000e+00 : f32
    %64 = vector.broadcast %cst_39 : f32 to vector<8x256xf32>
    %65 = arith.select %7, %63, %64 : vector<8x256xi1>, vector<8x256xf32>
    %66 = vector.extract_strided_slice %62 {offsets = [0, 1], sizes = [8, 256], strides = [1, 1]} : vector<8x290xf32> to vector<8x256xf32>
    %67 = vector.extract_strided_slice %62 {offsets = [0, 2], sizes = [8, 256], strides = [1, 1]} : vector<8x290xf32> to vector<8x256xf32>
    %cst_40 = arith.constant 0.000000e+00 : f32
    %68 = vector.broadcast %cst_40 : f32 to vector<8x256xf32>
    %69 = arith.select %5, %67, %68 : vector<8x256xi1>, vector<8x256xf32>
    %70 = vector.extract_strided_slice %62 {offsets = [0, 16], sizes = [8, 256], strides = [1, 1]} : vector<8x290xf32> to vector<8x256xf32>
    %cst_41 = arith.constant 0.000000e+00 : f32
    %71 = vector.broadcast %cst_41 : f32 to vector<8x256xf32>
    %72 = arith.select %7, %70, %71 : vector<8x256xi1>, vector<8x256xf32>
    %73 = vector.extract_strided_slice %62 {offsets = [0, 17], sizes = [8, 256], strides = [1, 1]} : vector<8x290xf32> to vector<8x256xf32>
    %74 = vector.extract_strided_slice %62 {offsets = [0, 18], sizes = [8, 256], strides = [1, 1]} : vector<8x290xf32> to vector<8x256xf32>
    %cst_42 = arith.constant 0.000000e+00 : f32
    %75 = vector.broadcast %cst_42 : f32 to vector<8x256xf32>
    %76 = arith.select %5, %74, %75 : vector<8x256xi1>, vector<8x256xf32>
    %77 = vector.extract_strided_slice %62 {offsets = [0, 32], sizes = [8, 256], strides = [1, 1]} : vector<8x290xf32> to vector<8x256xf32>
    %cst_43 = arith.constant 0.000000e+00 : f32
    %78 = vector.broadcast %cst_43 : f32 to vector<8x256xf32>
    %79 = arith.select %7, %77, %78 : vector<8x256xi1>, vector<8x256xf32>
    %80 = vector.extract_strided_slice %62 {offsets = [0, 33], sizes = [8, 256], strides = [1, 1]} : vector<8x290xf32> to vector<8x256xf32>
    %81 = vector.extract_strided_slice %62 {offsets = [0, 34], sizes = [8, 256], strides = [1, 1]} : vector<8x290xf32> to vector<8x256xf32>
    %cst_44 = arith.constant 0.000000e+00 : f32
    %82 = vector.broadcast %cst_44 : f32 to vector<8x256xf32>
    %83 = arith.select %5, %81, %82 : vector<8x256xi1>, vector<8x256xf32>
    %84 = tpu.concatenate %65, %66, %69, %72, %73, %76, %79, %80, %83 in 0 : vector<8x256xf32>, vector<8x256xf32>, vector<8x256xf32>, vector<8x256xf32>, vector<8x256xf32>, vector<8x256xf32>, vector<8x256xf32>, vector<8x256xf32>, vector<8x256xf32> -> vector<72x256xf32>
    %c1 = arith.constant 1 : index
    %c0_45 = arith.constant 0 : index
    %c0_46 = arith.constant 0 : index
    %85 = vector.load %arg7[%c1, %c0_45, %c0_46] : memref<6x8x72xf32, #tpu.memory_space<vmem>>, vector<1x8x72xf32>
    %86 = vector.shape_cast %85 : vector<1x8x72xf32> to vector<8x72xf32>
    %cst_47 = arith.constant dense<0.000000e+00> : vector<8x256xf32>
    %87 = tpu.matmul %86, %84, %cst_47 {dimension_numbers = #tpu.dot_dimension_numbers<[1], [0], [0], [1], [0, 0, 1, 1], [], []>} : vector<8x72xf32>, vector<72x256xf32>, vector<8x256xf32> -> vector<8x256xf32>
    %c1_48 = arith.constant 1 : index
    %c0_49 = arith.constant 0 : index
    %c0_50 = arith.constant 0 : index
    %88 = vector.load %arg8[%c1_48, %c0_49, %c0_50] : memref<6x8x1xf32, #tpu.memory_space<vmem>>, vector<1x8x1xf32>
    %89 = vector.shape_cast %88 : vector<1x8x1xf32> to vector<8x1xf32>
    %90 = vector.broadcast %89 : vector<8x1xf32> to vector<8x256xf32>
    %91 = arith.addf %87, %90 : vector<8x256xf32>
    %92 = arith.addf %91, %25 : vector<8x256xf32>
    %cst_51 = arith.constant 0.000000e+00 : f32
    %93 = vector.broadcast %cst_51 : f32 to vector<8x256xf32>
    %94 = arith.maximumf %25, %93 : vector<8x256xf32>
    %cst_52 = arith.constant 0.000000e+00 : f32
    %95 = vector.broadcast %cst_52 : f32 to vector<8x17xf32>
    %96 = tpu.concatenate %95, %94, %95 in 1 : vector<8x17xf32>, vector<8x256xf32>, vector<8x17xf32> -> vector<8x290xf32>
    %97 = vector.extract_strided_slice %96 {offsets = [0, 0], sizes = [8, 256], strides = [1, 1]} : vector<8x290xf32> to vector<8x256xf32>
    %cst_53 = arith.constant 0.000000e+00 : f32
    %98 = vector.broadcast %cst_53 : f32 to vector<8x256xf32>
    %99 = arith.select %7, %97, %98 : vector<8x256xi1>, vector<8x256xf32>
    %100 = vector.extract_strided_slice %96 {offsets = [0, 1], sizes = [8, 256], strides = [1, 1]} : vector<8x290xf32> to vector<8x256xf32>
    %101 = vector.extract_strided_slice %96 {offsets = [0, 2], sizes = [8, 256], strides = [1, 1]} : vector<8x290xf32> to vector<8x256xf32>
    %cst_54 = arith.constant 0.000000e+00 : f32
    %102 = vector.broadcast %cst_54 : f32 to vector<8x256xf32>
    %103 = arith.select %5, %101, %102 : vector<8x256xi1>, vector<8x256xf32>
    %104 = vector.extract_strided_slice %96 {offsets = [0, 16], sizes = [8, 256], strides = [1, 1]} : vector<8x290xf32> to vector<8x256xf32>
    %cst_55 = arith.constant 0.000000e+00 : f32
    %105 = vector.broadcast %cst_55 : f32 to vector<8x256xf32>
    %106 = arith.select %7, %104, %105 : vector<8x256xi1>, vector<8x256xf32>
    %107 = vector.extract_strided_slice %96 {offsets = [0, 17], sizes = [8, 256], strides = [1, 1]} : vector<8x290xf32> to vector<8x256xf32>
    %108 = vector.extract_strided_slice %96 {offsets = [0, 18], sizes = [8, 256], strides = [1, 1]} : vector<8x290xf32> to vector<8x256xf32>
    %cst_56 = arith.constant 0.000000e+00 : f32
    %109 = vector.broadcast %cst_56 : f32 to vector<8x256xf32>
    %110 = arith.select %5, %108, %109 : vector<8x256xi1>, vector<8x256xf32>
    %111 = vector.extract_strided_slice %96 {offsets = [0, 32], sizes = [8, 256], strides = [1, 1]} : vector<8x290xf32> to vector<8x256xf32>
    %cst_57 = arith.constant 0.000000e+00 : f32
    %112 = vector.broadcast %cst_57 : f32 to vector<8x256xf32>
    %113 = arith.select %7, %111, %112 : vector<8x256xi1>, vector<8x256xf32>
    %114 = vector.extract_strided_slice %96 {offsets = [0, 33], sizes = [8, 256], strides = [1, 1]} : vector<8x290xf32> to vector<8x256xf32>
    %115 = vector.extract_strided_slice %96 {offsets = [0, 34], sizes = [8, 256], strides = [1, 1]} : vector<8x290xf32> to vector<8x256xf32>
    %cst_58 = arith.constant 0.000000e+00 : f32
    %116 = vector.broadcast %cst_58 : f32 to vector<8x256xf32>
    %117 = arith.select %5, %115, %116 : vector<8x256xi1>, vector<8x256xf32>
    %118 = tpu.concatenate %99, %100, %103, %106, %107, %110, %113, %114, %117 in 0 : vector<8x256xf32>, vector<8x256xf32>, vector<8x256xf32>, vector<8x256xf32>, vector<8x256xf32>, vector<8x256xf32>, vector<8x256xf32>, vector<8x256xf32>, vector<8x256xf32> -> vector<72x256xf32>
    %c2 = arith.constant 2 : index
    %c0_59 = arith.constant 0 : index
    %c0_60 = arith.constant 0 : index
    %119 = vector.load %arg7[%c2, %c0_59, %c0_60] : memref<6x8x72xf32, #tpu.memory_space<vmem>>, vector<1x8x72xf32>
    %120 = vector.shape_cast %119 : vector<1x8x72xf32> to vector<8x72xf32>
    %cst_61 = arith.constant dense<0.000000e+00> : vector<8x256xf32>
    %121 = tpu.matmul %120, %118, %cst_61 {dimension_numbers = #tpu.dot_dimension_numbers<[1], [0], [0], [1], [0, 0, 1, 1], [], []>} : vector<8x72xf32>, vector<72x256xf32>, vector<8x256xf32> -> vector<8x256xf32>
    %c2_62 = arith.constant 2 : index
    %c0_63 = arith.constant 0 : index
    %c0_64 = arith.constant 0 : index
    %122 = vector.load %arg8[%c2_62, %c0_63, %c0_64] : memref<6x8x1xf32, #tpu.memory_space<vmem>>, vector<1x8x1xf32>
    %123 = vector.shape_cast %122 : vector<1x8x1xf32> to vector<8x1xf32>
    %124 = vector.broadcast %123 : vector<8x1xf32> to vector<8x256xf32>
    %125 = arith.addf %121, %124 : vector<8x256xf32>
    %cst_65 = arith.constant 0.000000e+00 : f32
    %126 = vector.broadcast %cst_65 : f32 to vector<8x256xf32>
    %127 = arith.maximumf %125, %126 : vector<8x256xf32>
    %cst_66 = arith.constant 0.000000e+00 : f32
    %128 = vector.broadcast %cst_66 : f32 to vector<8x17xf32>
    %129 = tpu.concatenate %128, %127, %128 in 1 : vector<8x17xf32>, vector<8x256xf32>, vector<8x17xf32> -> vector<8x290xf32>
    %130 = vector.extract_strided_slice %129 {offsets = [0, 0], sizes = [8, 256], strides = [1, 1]} : vector<8x290xf32> to vector<8x256xf32>
    %cst_67 = arith.constant 0.000000e+00 : f32
    %131 = vector.broadcast %cst_67 : f32 to vector<8x256xf32>
    %132 = arith.select %7, %130, %131 : vector<8x256xi1>, vector<8x256xf32>
    %133 = vector.extract_strided_slice %129 {offsets = [0, 1], sizes = [8, 256], strides = [1, 1]} : vector<8x290xf32> to vector<8x256xf32>
    %134 = vector.extract_strided_slice %129 {offsets = [0, 2], sizes = [8, 256], strides = [1, 1]} : vector<8x290xf32> to vector<8x256xf32>
    %cst_68 = arith.constant 0.000000e+00 : f32
    %135 = vector.broadcast %cst_68 : f32 to vector<8x256xf32>
    %136 = arith.select %5, %134, %135 : vector<8x256xi1>, vector<8x256xf32>
    %137 = vector.extract_strided_slice %129 {offsets = [0, 16], sizes = [8, 256], strides = [1, 1]} : vector<8x290xf32> to vector<8x256xf32>
    %cst_69 = arith.constant 0.000000e+00 : f32
    %138 = vector.broadcast %cst_69 : f32 to vector<8x256xf32>
    %139 = arith.select %7, %137, %138 : vector<8x256xi1>, vector<8x256xf32>
    %140 = vector.extract_strided_slice %129 {offsets = [0, 17], sizes = [8, 256], strides = [1, 1]} : vector<8x290xf32> to vector<8x256xf32>
    %141 = vector.extract_strided_slice %129 {offsets = [0, 18], sizes = [8, 256], strides = [1, 1]} : vector<8x290xf32> to vector<8x256xf32>
    %cst_70 = arith.constant 0.000000e+00 : f32
    %142 = vector.broadcast %cst_70 : f32 to vector<8x256xf32>
    %143 = arith.select %5, %141, %142 : vector<8x256xi1>, vector<8x256xf32>
    %144 = vector.extract_strided_slice %129 {offsets = [0, 32], sizes = [8, 256], strides = [1, 1]} : vector<8x290xf32> to vector<8x256xf32>
    %cst_71 = arith.constant 0.000000e+00 : f32
    %145 = vector.broadcast %cst_71 : f32 to vector<8x256xf32>
    %146 = arith.select %7, %144, %145 : vector<8x256xi1>, vector<8x256xf32>
    %147 = vector.extract_strided_slice %129 {offsets = [0, 33], sizes = [8, 256], strides = [1, 1]} : vector<8x290xf32> to vector<8x256xf32>
    %148 = vector.extract_strided_slice %129 {offsets = [0, 34], sizes = [8, 256], strides = [1, 1]} : vector<8x290xf32> to vector<8x256xf32>
    %cst_72 = arith.constant 0.000000e+00 : f32
    %149 = vector.broadcast %cst_72 : f32 to vector<8x256xf32>
    %150 = arith.select %5, %148, %149 : vector<8x256xi1>, vector<8x256xf32>
    %151 = tpu.concatenate %132, %133, %136, %139, %140, %143, %146, %147, %150 in 0 : vector<8x256xf32>, vector<8x256xf32>, vector<8x256xf32>, vector<8x256xf32>, vector<8x256xf32>, vector<8x256xf32>, vector<8x256xf32>, vector<8x256xf32>, vector<8x256xf32> -> vector<72x256xf32>
    %c3 = arith.constant 3 : index
    %c0_73 = arith.constant 0 : index
    %c0_74 = arith.constant 0 : index
    %152 = vector.load %arg7[%c3, %c0_73, %c0_74] : memref<6x8x72xf32, #tpu.memory_space<vmem>>, vector<1x8x72xf32>
    %153 = vector.shape_cast %152 : vector<1x8x72xf32> to vector<8x72xf32>
    %cst_75 = arith.constant dense<0.000000e+00> : vector<8x256xf32>
    %154 = tpu.matmul %153, %151, %cst_75 {dimension_numbers = #tpu.dot_dimension_numbers<[1], [0], [0], [1], [0, 0, 1, 1], [], []>} : vector<8x72xf32>, vector<72x256xf32>, vector<8x256xf32> -> vector<8x256xf32>
    %c3_76 = arith.constant 3 : index
    %c0_77 = arith.constant 0 : index
    %c0_78 = arith.constant 0 : index
    %155 = vector.load %arg8[%c3_76, %c0_77, %c0_78] : memref<6x8x1xf32, #tpu.memory_space<vmem>>, vector<1x8x1xf32>
    %156 = vector.shape_cast %155 : vector<1x8x1xf32> to vector<8x1xf32>
    %157 = vector.broadcast %156 : vector<8x1xf32> to vector<8x256xf32>
    %158 = arith.addf %154, %157 : vector<8x256xf32>
    %cst_79 = arith.constant 0.000000e+00 : f32
    %159 = vector.broadcast %cst_79 : f32 to vector<8x17xf32>
    %160 = tpu.concatenate %159, %16, %159 in 1 : vector<8x17xf32>, vector<8x256xf32>, vector<8x17xf32> -> vector<8x290xf32>
    %161 = vector.extract_strided_slice %160 {offsets = [0, 0], sizes = [8, 256], strides = [1, 1]} : vector<8x290xf32> to vector<8x256xf32>
    %cst_80 = arith.constant 0.000000e+00 : f32
    %162 = vector.broadcast %cst_80 : f32 to vector<8x256xf32>
    %163 = arith.select %7, %161, %162 : vector<8x256xi1>, vector<8x256xf32>
    %164 = arith.addf %16, %163 : vector<8x256xf32>
    %165 = vector.extract_strided_slice %160 {offsets = [0, 1], sizes = [8, 256], strides = [1, 1]} : vector<8x290xf32> to vector<8x256xf32>
    %166 = arith.addf %164, %165 : vector<8x256xf32>
    %167 = vector.extract_strided_slice %160 {offsets = [0, 2], sizes = [8, 256], strides = [1, 1]} : vector<8x290xf32> to vector<8x256xf32>
    %cst_81 = arith.constant 0.000000e+00 : f32
    %168 = vector.broadcast %cst_81 : f32 to vector<8x256xf32>
    %169 = arith.select %5, %167, %168 : vector<8x256xi1>, vector<8x256xf32>
    %170 = arith.addf %166, %169 : vector<8x256xf32>
    %171 = vector.extract_strided_slice %160 {offsets = [0, 16], sizes = [8, 256], strides = [1, 1]} : vector<8x290xf32> to vector<8x256xf32>
    %cst_82 = arith.constant 0.000000e+00 : f32
    %172 = vector.broadcast %cst_82 : f32 to vector<8x256xf32>
    %173 = arith.select %7, %171, %172 : vector<8x256xi1>, vector<8x256xf32>
    %174 = arith.addf %170, %173 : vector<8x256xf32>
    %175 = vector.extract_strided_slice %160 {offsets = [0, 18], sizes = [8, 256], strides = [1, 1]} : vector<8x290xf32> to vector<8x256xf32>
    %cst_83 = arith.constant 0.000000e+00 : f32
    %176 = vector.broadcast %cst_83 : f32 to vector<8x256xf32>
    %177 = arith.select %5, %175, %176 : vector<8x256xi1>, vector<8x256xf32>
    %178 = arith.addf %174, %177 : vector<8x256xf32>
    %179 = vector.extract_strided_slice %160 {offsets = [0, 32], sizes = [8, 256], strides = [1, 1]} : vector<8x290xf32> to vector<8x256xf32>
    %cst_84 = arith.constant 0.000000e+00 : f32
    %180 = vector.broadcast %cst_84 : f32 to vector<8x256xf32>
    %181 = arith.select %7, %179, %180 : vector<8x256xi1>, vector<8x256xf32>
    %182 = arith.addf %178, %181 : vector<8x256xf32>
    %183 = vector.extract_strided_slice %160 {offsets = [0, 33], sizes = [8, 256], strides = [1, 1]} : vector<8x290xf32> to vector<8x256xf32>
    %184 = arith.addf %182, %183 : vector<8x256xf32>
    %185 = vector.extract_strided_slice %160 {offsets = [0, 34], sizes = [8, 256], strides = [1, 1]} : vector<8x290xf32> to vector<8x256xf32>
    %cst_85 = arith.constant 0.000000e+00 : f32
    %186 = vector.broadcast %cst_85 : f32 to vector<8x256xf32>
    %187 = arith.select %5, %185, %186 : vector<8x256xi1>, vector<8x256xf32>
    %188 = arith.addf %184, %187 : vector<8x256xf32>
    %189 = vector.broadcast %0 : vector<1x256xf32> to vector<8x256xf32>
    %190 = arith.mulf %188, %189 : vector<8x256xf32>
    %191 = arith.addf %158, %190 : vector<8x256xf32>
    %cst_86 = arith.constant 0xFF800000 : f32
    %192 = vector.broadcast %cst_86 : f32 to vector<8x17xf32>
    %193 = tpu.concatenate %192, %25, %192 in 1 : vector<8x17xf32>, vector<8x256xf32>, vector<8x17xf32> -> vector<8x290xf32>
    %194 = vector.extract_strided_slice %193 {offsets = [0, 0], sizes = [8, 256], strides = [1, 1]} : vector<8x290xf32> to vector<8x256xf32>
    %cst_87 = arith.constant 0xFF800000 : f32
    %195 = vector.broadcast %cst_87 : f32 to vector<8x256xf32>
    %196 = arith.select %7, %194, %195 : vector<8x256xi1>, vector<8x256xf32>
    %197 = arith.maximumf %25, %196 : vector<8x256xf32>
    %198 = vector.extract_strided_slice %193 {offsets = [0, 1], sizes = [8, 256], strides = [1, 1]} : vector<8x290xf32> to vector<8x256xf32>
    %199 = arith.maximumf %197, %198 : vector<8x256xf32>
    %200 = vector.extract_strided_slice %193 {offsets = [0, 2], sizes = [8, 256], strides = [1, 1]} : vector<8x290xf32> to vector<8x256xf32>
    %cst_88 = arith.constant 0xFF800000 : f32
    %201 = vector.broadcast %cst_88 : f32 to vector<8x256xf32>
    %202 = arith.select %5, %200, %201 : vector<8x256xi1>, vector<8x256xf32>
    %203 = arith.maximumf %199, %202 : vector<8x256xf32>
    %204 = vector.extract_strided_slice %193 {offsets = [0, 16], sizes = [8, 256], strides = [1, 1]} : vector<8x290xf32> to vector<8x256xf32>
    %cst_89 = arith.constant 0xFF800000 : f32
    %205 = vector.broadcast %cst_89 : f32 to vector<8x256xf32>
    %206 = arith.select %7, %204, %205 : vector<8x256xi1>, vector<8x256xf32>
    %207 = arith.maximumf %203, %206 : vector<8x256xf32>
    %208 = vector.extract_strided_slice %193 {offsets = [0, 18], sizes = [8, 256], strides = [1, 1]} : vector<8x290xf32> to vector<8x256xf32>
    %cst_90 = arith.constant 0xFF800000 : f32
    %209 = vector.broadcast %cst_90 : f32 to vector<8x256xf32>
    %210 = arith.select %5, %208, %209 : vector<8x256xi1>, vector<8x256xf32>
    %211 = arith.maximumf %207, %210 : vector<8x256xf32>
    %212 = vector.extract_strided_slice %193 {offsets = [0, 32], sizes = [8, 256], strides = [1, 1]} : vector<8x290xf32> to vector<8x256xf32>
    %cst_91 = arith.constant 0xFF800000 : f32
    %213 = vector.broadcast %cst_91 : f32 to vector<8x256xf32>
    %214 = arith.select %7, %212, %213 : vector<8x256xi1>, vector<8x256xf32>
    %215 = arith.maximumf %211, %214 : vector<8x256xf32>
    %216 = vector.extract_strided_slice %193 {offsets = [0, 33], sizes = [8, 256], strides = [1, 1]} : vector<8x290xf32> to vector<8x256xf32>
    %217 = arith.maximumf %215, %216 : vector<8x256xf32>
    %218 = vector.extract_strided_slice %193 {offsets = [0, 34], sizes = [8, 256], strides = [1, 1]} : vector<8x290xf32> to vector<8x256xf32>
    %cst_92 = arith.constant 0xFF800000 : f32
    %219 = vector.broadcast %cst_92 : f32 to vector<8x256xf32>
    %220 = arith.select %5, %218, %219 : vector<8x256xi1>, vector<8x256xf32>
    %221 = arith.maximumf %217, %220 : vector<8x256xf32>
    %222 = arith.addf %92, %221 : vector<8x256xf32>
    %cst_93 = arith.constant 0.000000e+00 : f32
    %223 = vector.broadcast %cst_93 : f32 to vector<8x256xf32>
    %224 = arith.maximumf %92, %223 : vector<8x256xf32>
    %cst_94 = arith.constant 0.000000e+00 : f32
    %225 = vector.broadcast %cst_94 : f32 to vector<8x17xf32>
    %226 = tpu.concatenate %225, %224, %225 in 1 : vector<8x17xf32>, vector<8x256xf32>, vector<8x17xf32> -> vector<8x290xf32>
    %227 = vector.extract_strided_slice %226 {offsets = [0, 0], sizes = [8, 256], strides = [1, 1]} : vector<8x290xf32> to vector<8x256xf32>
    %cst_95 = arith.constant 0.000000e+00 : f32
    %228 = vector.broadcast %cst_95 : f32 to vector<8x256xf32>
    %229 = arith.select %7, %227, %228 : vector<8x256xi1>, vector<8x256xf32>
    %230 = vector.extract_strided_slice %226 {offsets = [0, 1], sizes = [8, 256], strides = [1, 1]} : vector<8x290xf32> to vector<8x256xf32>
    %231 = vector.extract_strided_slice %226 {offsets = [0, 2], sizes = [8, 256], strides = [1, 1]} : vector<8x290xf32> to vector<8x256xf32>
    %cst_96 = arith.constant 0.000000e+00 : f32
    %232 = vector.broadcast %cst_96 : f32 to vector<8x256xf32>
    %233 = arith.select %5, %231, %232 : vector<8x256xi1>, vector<8x256xf32>
    %234 = vector.extract_strided_slice %226 {offsets = [0, 16], sizes = [8, 256], strides = [1, 1]} : vector<8x290xf32> to vector<8x256xf32>
    %cst_97 = arith.constant 0.000000e+00 : f32
    %235 = vector.broadcast %cst_97 : f32 to vector<8x256xf32>
    %236 = arith.select %7, %234, %235 : vector<8x256xi1>, vector<8x256xf32>
    %237 = vector.extract_strided_slice %226 {offsets = [0, 17], sizes = [8, 256], strides = [1, 1]} : vector<8x290xf32> to vector<8x256xf32>
    %238 = vector.extract_strided_slice %226 {offsets = [0, 18], sizes = [8, 256], strides = [1, 1]} : vector<8x290xf32> to vector<8x256xf32>
    %cst_98 = arith.constant 0.000000e+00 : f32
    %239 = vector.broadcast %cst_98 : f32 to vector<8x256xf32>
    %240 = arith.select %5, %238, %239 : vector<8x256xi1>, vector<8x256xf32>
    %241 = vector.extract_strided_slice %226 {offsets = [0, 32], sizes = [8, 256], strides = [1, 1]} : vector<8x290xf32> to vector<8x256xf32>
    %cst_99 = arith.constant 0.000000e+00 : f32
    %242 = vector.broadcast %cst_99 : f32 to vector<8x256xf32>
    %243 = arith.select %7, %241, %242 : vector<8x256xi1>, vector<8x256xf32>
    %244 = vector.extract_strided_slice %226 {offsets = [0, 33], sizes = [8, 256], strides = [1, 1]} : vector<8x290xf32> to vector<8x256xf32>
    %245 = vector.extract_strided_slice %226 {offsets = [0, 34], sizes = [8, 256], strides = [1, 1]} : vector<8x290xf32> to vector<8x256xf32>
    %cst_100 = arith.constant 0.000000e+00 : f32
    %246 = vector.broadcast %cst_100 : f32 to vector<8x256xf32>
    %247 = arith.select %5, %245, %246 : vector<8x256xi1>, vector<8x256xf32>
    %248 = tpu.concatenate %229, %230, %233, %236, %237, %240, %243, %244, %247 in 0 : vector<8x256xf32>, vector<8x256xf32>, vector<8x256xf32>, vector<8x256xf32>, vector<8x256xf32>, vector<8x256xf32>, vector<8x256xf32>, vector<8x256xf32>, vector<8x256xf32> -> vector<72x256xf32>
    %c4 = arith.constant 4 : index
    %c0_101 = arith.constant 0 : index
    %c0_102 = arith.constant 0 : index
    %249 = vector.load %arg7[%c4, %c0_101, %c0_102] : memref<6x8x72xf32, #tpu.memory_space<vmem>>, vector<1x8x72xf32>
    %250 = vector.shape_cast %249 : vector<1x8x72xf32> to vector<8x72xf32>
    %cst_103 = arith.constant dense<0.000000e+00> : vector<8x256xf32>
    %251 = tpu.matmul %250, %248, %cst_103 {dimension_numbers = #tpu.dot_dimension_numbers<[1], [0], [0], [1], [0, 0, 1, 1], [], []>} : vector<8x72xf32>, vector<72x256xf32>, vector<8x256xf32> -> vector<8x256xf32>
    %c4_104 = arith.constant 4 : index
    %c0_105 = arith.constant 0 : index
    %c0_106 = arith.constant 0 : index
    %252 = vector.load %arg8[%c4_104, %c0_105, %c0_106] : memref<6x8x1xf32, #tpu.memory_space<vmem>>, vector<1x8x1xf32>
    %253 = vector.shape_cast %252 : vector<1x8x1xf32> to vector<8x1xf32>
    %254 = vector.broadcast %253 : vector<8x1xf32> to vector<8x256xf32>
    %255 = arith.addf %251, %254 : vector<8x256xf32>
    %cst_107 = arith.constant 0.000000e+00 : f32
    %256 = vector.broadcast %cst_107 : f32 to vector<8x256xf32>
    %257 = arith.maximumf %255, %256 : vector<8x256xf32>
    %cst_108 = arith.constant 0.000000e+00 : f32
    %258 = vector.broadcast %cst_108 : f32 to vector<8x17xf32>
    %259 = tpu.concatenate %258, %257, %258 in 1 : vector<8x17xf32>, vector<8x256xf32>, vector<8x17xf32> -> vector<8x290xf32>
    %260 = vector.extract_strided_slice %259 {offsets = [0, 0], sizes = [8, 256], strides = [1, 1]} : vector<8x290xf32> to vector<8x256xf32>
    %cst_109 = arith.constant 0.000000e+00 : f32
    %261 = vector.broadcast %cst_109 : f32 to vector<8x256xf32>
    %262 = arith.select %7, %260, %261 : vector<8x256xi1>, vector<8x256xf32>
    %263 = vector.extract_strided_slice %259 {offsets = [0, 1], sizes = [8, 256], strides = [1, 1]} : vector<8x290xf32> to vector<8x256xf32>
    %264 = vector.extract_strided_slice %259 {offsets = [0, 2], sizes = [8, 256], strides = [1, 1]} : vector<8x290xf32> to vector<8x256xf32>
    %cst_110 = arith.constant 0.000000e+00 : f32
    %265 = vector.broadcast %cst_110 : f32 to vector<8x256xf32>
    %266 = arith.select %5, %264, %265 : vector<8x256xi1>, vector<8x256xf32>
    %267 = vector.extract_strided_slice %259 {offsets = [0, 16], sizes = [8, 256], strides = [1, 1]} : vector<8x290xf32> to vector<8x256xf32>
    %cst_111 = arith.constant 0.000000e+00 : f32
    %268 = vector.broadcast %cst_111 : f32 to vector<8x256xf32>
    %269 = arith.select %7, %267, %268 : vector<8x256xi1>, vector<8x256xf32>
    %270 = vector.extract_strided_slice %259 {offsets = [0, 17], sizes = [8, 256], strides = [1, 1]} : vector<8x290xf32> to vector<8x256xf32>
    %271 = vector.extract_strided_slice %259 {offsets = [0, 18], sizes = [8, 256], strides = [1, 1]} : vector<8x290xf32> to vector<8x256xf32>
    %cst_112 = arith.constant 0.000000e+00 : f32
    %272 = vector.broadcast %cst_112 : f32 to vector<8x256xf32>
    %273 = arith.select %5, %271, %272 : vector<8x256xi1>, vector<8x256xf32>
    %274 = vector.extract_strided_slice %259 {offsets = [0, 32], sizes = [8, 256], strides = [1, 1]} : vector<8x290xf32> to vector<8x256xf32>
    %cst_113 = arith.constant 0.000000e+00 : f32
    %275 = vector.broadcast %cst_113 : f32 to vector<8x256xf32>
    %276 = arith.select %7, %274, %275 : vector<8x256xi1>, vector<8x256xf32>
    %277 = vector.extract_strided_slice %259 {offsets = [0, 33], sizes = [8, 256], strides = [1, 1]} : vector<8x290xf32> to vector<8x256xf32>
    %278 = vector.extract_strided_slice %259 {offsets = [0, 34], sizes = [8, 256], strides = [1, 1]} : vector<8x290xf32> to vector<8x256xf32>
    %cst_114 = arith.constant 0.000000e+00 : f32
    %279 = vector.broadcast %cst_114 : f32 to vector<8x256xf32>
    %280 = arith.select %5, %278, %279 : vector<8x256xi1>, vector<8x256xf32>
    %281 = tpu.concatenate %262, %263, %266, %269, %270, %273, %276, %277, %280 in 0 : vector<8x256xf32>, vector<8x256xf32>, vector<8x256xf32>, vector<8x256xf32>, vector<8x256xf32>, vector<8x256xf32>, vector<8x256xf32>, vector<8x256xf32>, vector<8x256xf32> -> vector<72x256xf32>
    %c5 = arith.constant 5 : index
    %c0_115 = arith.constant 0 : index
    %c0_116 = arith.constant 0 : index
    %282 = vector.load %arg7[%c5, %c0_115, %c0_116] : memref<6x8x72xf32, #tpu.memory_space<vmem>>, vector<1x8x72xf32>
    %283 = vector.shape_cast %282 : vector<1x8x72xf32> to vector<8x72xf32>
    %cst_117 = arith.constant dense<0.000000e+00> : vector<8x256xf32>
    %284 = tpu.matmul %283, %281, %cst_117 {dimension_numbers = #tpu.dot_dimension_numbers<[1], [0], [0], [1], [0, 0, 1, 1], [], []>} : vector<8x72xf32>, vector<72x256xf32>, vector<8x256xf32> -> vector<8x256xf32>
    %c5_118 = arith.constant 5 : index
    %c0_119 = arith.constant 0 : index
    %c0_120 = arith.constant 0 : index
    %285 = vector.load %arg8[%c5_118, %c0_119, %c0_120] : memref<6x8x1xf32, #tpu.memory_space<vmem>>, vector<1x8x1xf32>
    %286 = vector.shape_cast %285 : vector<1x8x1xf32> to vector<8x1xf32>
    %287 = vector.broadcast %286 : vector<8x1xf32> to vector<8x256xf32>
    %288 = arith.addf %284, %287 : vector<8x256xf32>
    %289 = arith.addf %288, %191 : vector<8x256xf32>
    %c0_121 = arith.constant 0 : index
    %c0_122 = arith.constant 0 : index
    %c0_123 = arith.constant 0 : index
    %c0_124 = arith.constant 0 : index
    %290 = vector.load %arg11[%c0_121, %c0_122, %c0_123, %c0_124] : memref<1x4x8x256xf32, #tpu.memory_space<vmem>>, vector<1x1x8x256xf32>
    %291 = vector.shape_cast %290 : vector<1x1x8x256xf32> to vector<8x256xf32>
    %292 = vector.shape_cast %92 : vector<8x256xf32> to vector<1x1x8x256xf32>
    tpu.vector_store %arg11[%c0_121, %c0_122, %c0_123, %c0_124], %292 {strides = array<i32>} : memref<1x4x8x256xf32, #tpu.memory_space<vmem>>, vector<1x1x8x256xf32>,
    %c0_125 = arith.constant 0 : index
    %c1_126 = arith.constant 1 : index
    %c0_127 = arith.constant 0 : index
    %c0_128 = arith.constant 0 : index
    %293 = vector.load %arg11[%c0_125, %c1_126, %c0_127, %c0_128] : memref<1x4x8x256xf32, #tpu.memory_space<vmem>>, vector<1x1x8x256xf32>
    %294 = vector.shape_cast %293 : vector<1x1x8x256xf32> to vector<8x256xf32>
    %295 = vector.shape_cast %191 : vector<8x256xf32> to vector<1x1x8x256xf32>
    tpu.vector_store %arg11[%c0_125, %c1_126, %c0_127, %c0_128], %295 {strides = array<i32>} : memref<1x4x8x256xf32, #tpu.memory_space<vmem>>, vector<1x1x8x256xf32>,
    %c0_129 = arith.constant 0 : index
    %c2_130 = arith.constant 2 : index
    %c0_131 = arith.constant 0 : index
    %c0_132 = arith.constant 0 : index
    %296 = vector.load %arg11[%c0_129, %c2_130, %c0_131, %c0_132] : memref<1x4x8x256xf32, #tpu.memory_space<vmem>>, vector<1x1x8x256xf32>
    %297 = vector.shape_cast %296 : vector<1x1x8x256xf32> to vector<8x256xf32>
    %298 = vector.shape_cast %222 : vector<8x256xf32> to vector<1x1x8x256xf32>
    tpu.vector_store %arg11[%c0_129, %c2_130, %c0_131, %c0_132], %298 {strides = array<i32>} : memref<1x4x8x256xf32, #tpu.memory_space<vmem>>, vector<1x1x8x256xf32>,
    %c0_133 = arith.constant 0 : index
    %c3_134 = arith.constant 3 : index
    %c0_135 = arith.constant 0 : index
    %c0_136 = arith.constant 0 : index
    %299 = vector.load %arg11[%c0_133, %c3_134, %c0_135, %c0_136] : memref<1x4x8x256xf32, #tpu.memory_space<vmem>>, vector<1x1x8x256xf32>
    %300 = vector.shape_cast %299 : vector<1x1x8x256xf32> to vector<8x256xf32>
    %301 = vector.shape_cast %289 : vector<8x256xf32> to vector<1x1x8x256xf32>
    tpu.vector_store %arg11[%c0_133, %c3_134, %c0_135, %c0_136], %301 {strides = array<i32>} : memref<1x4x8x256xf32, #tpu.memory_space<vmem>>, vector<1x1x8x256xf32>,
    return
  }
  func.func @transform_0(%arg0: i32) -> (i32, i32, i32) {
    %c0_i32 = arith.constant 0 : i32
    %c0_i32_0 = arith.constant 0 : i32
    %c0_i32_1 = arith.constant 0 : i32
    return %arg0, %c0_i32, %c0_i32_0 : i32, i32, i32
  }
  func.func @transform_1(%arg0: i32) -> (i32, i32, i32) {
    %c0_i32 = arith.constant 0 : i32
    %c0_i32_0 = arith.constant 0 : i32
    %c0_i32_1 = arith.constant 0 : i32
    return %arg0, %c0_i32, %c0_i32_0 : i32, i32, i32
  }
  func.func @transform_2(%arg0: i32) -> (i32, i32) {
    %c0_i32 = arith.constant 0 : i32
    %c0_i32_0 = arith.constant 0 : i32
    %c0_i32_1 = arith.constant 0 : i32
    return %c0_i32, %c0_i32_0 : i32, i32
  }
  func.func @transform_3(%arg0: i32) -> (i32, i32) {
    %c0_i32 = arith.constant 0 : i32
    %c0_i32_0 = arith.constant 0 : i32
    %c0_i32_1 = arith.constant 0 : i32
    return %c0_i32, %c0_i32_0 : i32, i32
  }
  func.func @transform_4(%arg0: i32) -> (i32, i32) {
    %c0_i32 = arith.constant 0 : i32
    %c0_i32_0 = arith.constant 0 : i32
    %c0_i32_1 = arith.constant 0 : i32
    return %c0_i32, %c0_i32_0 : i32, i32
  }
  func.func @transform_5(%arg0: i32) -> (i32, i32) {
    %c0_i32 = arith.constant 0 : i32
    %c0_i32_0 = arith.constant 0 : i32
    %c0_i32_1 = arith.constant 0 : i32
    return %c0_i32, %c0_i32_0 : i32, i32
  }
  func.func @transform_6(%arg0: i32) -> (i32, i32, i32) {
    %c0_i32 = arith.constant 0 : i32
    %c0_i32_0 = arith.constant 0 : i32
    %c0_i32_1 = arith.constant 0 : i32
    %c0_i32_2 = arith.constant 0 : i32
    return %c0_i32, %c0_i32_0, %c0_i32_1 : i32, i32, i32
  }
  func.func @transform_7(%arg0: i32) -> (i32, i32, i32) {
    %c0_i32 = arith.constant 0 : i32
    %c0_i32_0 = arith.constant 0 : i32
    %c0_i32_1 = arith.constant 0 : i32
    %c0_i32_2 = arith.constant 0 : i32
    return %c0_i32, %c0_i32_0, %c0_i32_1 : i32, i32, i32
  }
  func.func @transform_8(%arg0: i32) -> (i32, i32) {
    %c0_i32 = arith.constant 0 : i32
    %c0_i32_0 = arith.constant 0 : i32
    %c0_i32_1 = arith.constant 0 : i32
    return %c0_i32, %c0_i32_0 : i32, i32
  }
  func.func @transform_9(%arg0: i32) -> (i32, i32) {
    %c0_i32 = arith.constant 0 : i32
    %c0_i32_0 = arith.constant 0 : i32
    %c0_i32_1 = arith.constant 0 : i32
    return %c0_i32, %c0_i32_0 : i32, i32
  }
  func.func @transform_10(%arg0: i32) -> (i32, i32, i32, i32) {
    %c0_i32 = arith.constant 0 : i32
    %c0_i32_0 = arith.constant 0 : i32
    %c0_i32_1 = arith.constant 0 : i32
    %c0_i32_2 = arith.constant 0 : i32
    return %arg0, %c0_i32, %c0_i32_0, %c0_i32_1 : i32, i32, i32, i32
  }
}

</mosaic_0001>

<bundles_post_ra>
// kernel: a_call__.1
= control target key start
LH: loop header
LB: loop body
LE: loop exit
PB: predicated region body
PF: predicated region fallthrough
CT: control target
= control target key end

     0   :  { %s2110_s13 = smov 0   ;;  %s3023_s0 = inlined_call_operand.vmem [shape: f32[2,8,256], index: 0, kind: input, shape index: {}]   ;;  %s3024_s1 = inlined_call_operand.vmem [shape: f32[2,8,256], index: 1, kind: input, shape index: {}]   ;;  %s3025_s2 = inlined_call_operand.vmem [shape: f32[8,8], index: 2, kind: input, shape index: {}]   ;;  %s3026_s3 = inlined_call_operand.vmem [shape: f32[8,1], index: 3, kind: input, shape index: {}]   ;;  %s3027_s4 = inlined_call_operand.vmem [shape: f32[8,8], index: 4, kind: input, shape index: {}]   ;;  %s3028_s5 = inlined_call_operand.vmem [shape: f32[8,1], index: 5, kind: input, shape index: {}]   ;;  %s3029_s6 = inlined_call_operand.vmem [shape: f32[6,8,72], index: 6, kind: input, shape index: {}]   ;;  %s3030_s7 = inlined_call_operand.vmem [shape: f32[6,8,1], index: 7, kind: input, shape index: {}]   ;;  %s3031_s8 = inlined_call_operand.vmem [shape: f32[1,256], index: 8, kind: input, shape index: {}]   ;;  %s3032_s9 = inlined_call_operand.vmem [shape: f32[1,256], index: 9, kind: input, shape index: {}]   ;;  %s3033_s10 = inlined_call_operand.vmem [shape: f32[2,4,8,256], index: 10, kind: output, shape index: {}]  }
   0x1 LB: > { %s1785_s14 = sadd.s32 4294967295, %s2043_s13   ;;  %p1789_p0 = scmp.ge.s32.totalorder %s2043_s13, 1  ;;  %s2043_s13 = sphi %s2110_s13, %s20_s13  }
   0x2   : > { %p322_p1 = scmp.lt.s32.totalorder %s2043_s13, 3 }
   0x4   : > { %p323_p2 = pnand %p1789_p0, %p322_p1 }
   0x5   : > { %p365_p3 = scmp.lt.s32.totalorder (!%p323_p2), %s1785_s14, 1  ;;  %s2046_s23 = smov (!%p323_p2), 17  }
   0x6   : > { %326 = sbr.rel (%p323_p2) target bundleno = 2158 (0x86e), region = 60  ;;  %s2047_s24 = smov (!%p323_p2), 94  }
   0x7   : > { %s2048_s25 = smov (!%p323_p2), 95   ;;  %s2049_s26 = smov (!%p323_p2), 96  }
   0x8   : > { %s2050_s27 = smov (!%p323_p2), 110   ;;  %s2051_s28 = smov (!%p323_p2), 111  }
   0x9   : > { %s2052_s29 = smov (!%p323_p2), 112   ;;  %s2053_s30 = smov (!%p323_p2), 126  }
   0xa   : > { %s2054_s15 = smov (!%p323_p2), 127  }
   0xb   : > { %v396_v0 = vld [vmem:[%s3026_s3] sm:$0xff]  ;;  %v2045_v1 = vmov 0   ;;  %s3043_s14 = smov (!%p365_p3, %s1785_s14), 1  ;;  %vm402_vm0 = vcmask 64512   ;;  %vm508_vm1 = vcmask 138240   ;;  %vm577_vm2 = vcmask 769024  }
   0xc   : > { %1923 = vset.pattern.permute.xlu0 %v2045_v1  ;;  %1954 = vset.pattern.permute.xlu1 %v2045_v1  ;;  %s1902_s17 = sshll.u32 %s3043_s14, 4  ;;  %v395_v6 = vld [vmem:[%s3025_s2] sm:$0xff]  ;;  %vm612_vm5 = vcmask 777216   ;;  %vm564_vm6 = vcmask 785408   ;;  %vm551_vm9 = vcmask 900096   ;;  %vm601_vm10 = vcmask 908288  }
   0xd   : > { %399 = vperm.xlu0 %1923, %v396_v0   ;;  %s369_s20 = scalar_lea.vmem %s3023_s0, %s1902_s17  ;;  %v618_v20 = vld [vmem:[%s3030_s7] sm:$0xff]  ;;  %vm538_vm11 = vcmask 916480   ;;  %vm525_vm12 = vcmask 1031168   ;;  %vm590_vm13 = vcmask 1039360   ;;  %vm624_vm14 = vcmask 588800   ;;  %s374_s11 = scalar_lea.vmem %s3024_s1, %s1902_s17 }
   0xe   : > { %v391_v2 = vld [vmem:[%s369_s20] sm:$0xff]  ;;  %v392_v3 = vld [vmem:[%s369_s20 + $0x8] sm:$0xff] }
   0xf   : > { %v393_v4 = vmax.f32 %v391_v2, 0.0  ;;  %v394_v5 = vmax.f32 %v392_v3, 0.0  ;;  %v381_v22 = vld [vmem:[%s3032_s9] sm:$0x3] }
  0x10   : > { %v384_v23 = vperm.slane %v381_v22, 1  ;;  %v383_v28 = vperm.slane %v381_v22, 0  ;;  %v446_v22 = vld [vmem:[%s374_s11] sm:$0xff] }
  0x11   : > { %421 = vmatpush.msra.mxu0 %v393_v4  ;;  %441 = vmatpush.msra.mxu1 %v394_v5 }
  0x12   : > { %1796 = vmatmul.msk.f32.vlgmr.msra.gmra.mxu0 %vm402_vm0, %v395_v6  ;;  %1797 = vmatmul.msk.f32.vlgmr.msra.gmra.mxu1 %vm402_vm0, %v395_v6  ;;  %vm2188_vm3 = vcmp.le.f32.partialorder %v384_v23, 14.0  ;;  %vm2195_vm4 = vcmp.le.f32.partialorder %v383_v28, 14.0  ;;  %vm2204_vm7 = vcmp.ge.f32.partialorder %v383_v28, 1.0  ;;  %vm2211_vm8 = vcmp.ge.f32.partialorder %v384_v23, 1.0  ;;  %v447_v23 = vld [vmem:[%s374_s11 + $0x8] sm:$0xff]  ;;  %s1904_s11 = sshll.u32 %s3043_s14, 6 }
  0x13   : > { %s2391_s16 = scalar_lea.vmem %s3033_s10, %s1904_s11 }
  0x7f   : > { %v400_v7 = vpop.permute.xlu0 %399 }
  0x8f   : > { %v423_v8 = vpop.f32.mrf.mxu0  ;;  %v443_v9 = vpop.f32.mrf.mxu1 }
  0x90   : > { %v2134_v10 = vadd.f32 %v423_v8, %v400_v7  ;;  %v2136_v11 = vadd.f32 %v443_v9, %v400_v7  ;;  %v617_v7 = vld [vmem:[%s3029_s6] sm:$0xff] }
  0x92   : > { %v501_v12 = vmax.f32 %v2136_v11, 0.0  ;;  %v500_v13 = vmax.f32 %v2134_v10, 0.0 }
  0x94   : > { %506 = vrot.lane.b32.xlu1 %v501_v12, %s2046_s23  ;;  %504 = vrot.lane.b32.xlu0 %v500_v13, %s2046_s23 }
 0x106   : > { %v507_v14 = vpop.permute.xlu1 %506  ;;  %v505_v15 = vpop.permute.xlu0 %504 }
 0x107   : > { %v2143_v16 = vsel %vm508_vm1, %v505_v15, %v507_v14  ;;  %v2146_v17 = vsel %vm508_vm1, 0.0, %v505_v15  ;;  %v514_v19 = vsel %vm508_vm1, %v507_v14, 0.0 }
 0x108   : > { %571 = vrot.lane.b32.xlu1 %v2146_v17, %s2047_s24  ;;  %573 = vrot.lane.b32.xlu2 %v2143_v16, %s2047_s24  ;;  %v1924_v18 = vpack.i.bf16 %v2143_v16, %v2146_v17 }
 0x10a   : > { %1925 = vrot.lane.b32.xlu0 %v1924_v18, %s2048_s25 }
 0x110   : > { %610 = vrot.lane.b32.xlu1 %v514_v19, %s2048_s25  ;;  %575 = vrot.lane.b32.xlu2 %v514_v19, %s2047_s24 }
 0x112   : > { %560 = vrot.lane.b32.xlu0 %v2143_v16, %s2049_s26 }
 0x118   : > { %562 = vrot.lane.b32.xlu1 %v514_v19, %s2049_s26  ;;  %558 = vrot.lane.b32.xlu2 %v2146_v17, %s2049_s26 }
 0x11a   : > { %547 = vrot.lane.b32.xlu0 %v2143_v16, %s2050_s27 }
 0x120   : > { %549 = vrot.lane.b32.xlu1 %v514_v19, %s2050_s27  ;;  %545 = vrot.lane.b32.xlu2 %v2146_v17, %s2050_s27 }
 0x122   : > { %599 = vrot.lane.b32.xlu0 %v514_v19, %s2051_s28 }
 0x128   : > { %532 = vrot.lane.b32.xlu1 %v2146_v17, %s2052_s29  ;;  %1930 = vrot.lane.b32.xlu2 %v1924_v18, %s2051_s28 }
 0x12a   : > { %536 = vrot.lane.b32.xlu0 %v514_v19, %s2052_s29 }
 0x130   : > { %519 = vrot.lane.b32.xlu1 %v2146_v17, %s2053_s30  ;;  %534 = vrot.lane.b32.xlu2 %v2143_v16, %s2052_s29 }
 0x132   : > { %523 = vrot.lane.b32.xlu0 %v514_v19, %s2053_s30 }
 0x138   : > { %1935 = vrot.lane.b32.xlu1 %v1924_v18, %s2054_s15  ;;  %521 = vrot.lane.b32.xlu2 %v2143_v16, %s2053_s30 }
 0x13a   : > { %621 = vperm.xlu0 %1923, %v618_v20  }
 0x140   : > { %588 = vrot.lane.b32.xlu2 %v514_v19, %s2054_s15 }
 0x162   : > { %v574_v21 = vpop.permute.xlu2 %573 }
 0x16a   : > { %v576_v25 = vpop.permute.xlu2 %575 }
 0x16b   : > { %v579_v26 = vsel %vm577_vm2, %v574_v21, %v576_v25  ;;  %v448_v25 = vmax.f32 %v446_v22, 0.0 }
 0x16c   : > { %1807 = vmatpush.msk.msrb.mxu1 %vm2188_vm3, %v579_v26  ;;  %v449_v26 = vmax.f32 %v447_v23, 0.0 }
 0x16d   : > { %475 = vmatpush.msra.mxu2 %v448_v25 }
 0x16e   : > { %495 = vmatpush.msra.mxu3 %v449_v26 }
 0x172   : > { %v559_v27 = vpop.permute.xlu2 %558 }
 0x17a   : > { %v572_v30 = vpop.permute.xlu1 %571  ;;  %v546_v35 = vpop.permute.xlu2 %545 }
 0x17b   : > { %v578_v31 = vsel %vm577_vm2, %v572_v30, %v574_v21  ;;  %v451_v30 = vld [vmem:[%s3028_s5] sm:$0xff] }
 0x17c   : > { %v1926_v32 = vpop.permute.xlu0 %1925  ;;  %1800 = vmatpush.msk.msrb.mxu0 %vm2195_vm4, %v578_v31 }
 0x17d   : > { %v1928_v33 = vunpack.i.h.bf16 %v1926_v32  ;;  %v1927_v34 = vunpack.i.l.bf16 %v1926_v32 }
 0x17f   : > { %v613_v36 = vsel %vm612_vm5, %v1927_v34, %v1928_v33 }
 0x180   : > { %636 = vmatpush.msrb.mxu0 %v613_v36 }
 0x182   : > { %v611_v37 = vpop.permute.xlu1 %610  ;;  %v1931_v42 = vpop.permute.xlu2 %1930 }
 0x183   : > { %v614_v38 = vsel %vm612_vm5, %v1928_v33, %v611_v37  ;;  %v1933_v45 = vunpack.i.h.bf16 %v1931_v42  ;;  %v1932_v46 = vunpack.i.l.bf16 %v1931_v42 }
 0x184   : > { %v561_v40 = vpop.permute.xlu0 %560  ;;  %656 = vmatpush.msrb.mxu1 %v614_v38 }
 0x185   : > { %v565_v41 = vsel %vm564_vm6, %v559_v27, %v561_v40  ;;  %v602_v50 = vsel %vm601_vm10, %v1932_v46, %v1933_v45  ;;  %v450_v27 = vld [vmem:[%s3027_s4] sm:$0xff] }
 0x186   : > { %1801 = vmatpush.msk.msrb.mxu0 %vm2204_vm7, %v565_v41  ;;  %1798 = vmatmul.msk.f32.vlgmr.msra.gmra.mxu2 %vm402_vm0, %v450_v27 }
 0x187   : > { %1799 = vmatmul.msk.f32.vlgmr.msra.gmra.mxu3 %vm402_vm0, %v450_v27 }
 0x18a   : > { %v563_v44 = vpop.permute.xlu1 %562  ;;  %v535_v55 = vpop.permute.xlu2 %534 }
 0x18b   : > { %v566_v47 = vsel %vm564_vm6, %v561_v40, %v563_v44 }
 0x18c   : > { %v548_v48 = vpop.permute.xlu0 %547  ;;  %1808 = vmatpush.msk.msrb.mxu1 %vm2211_vm8, %v566_v47 }
 0x18d   : > { %v552_v49 = vsel %vm551_vm9, %v546_v35, %v548_v48 }
 0x18e   : > { %1802 = vmatpush.msk.msrb.mxu0 %vm2195_vm4, %v552_v49 }
 0x190   : > { %639 = vmatpush.msrb.mxu0 %v602_v50 }
 0x192   : > { %v550_v51 = vpop.permute.xlu1 %549  ;;  %v522_v60 = vpop.permute.xlu2 %521 }
 0x193   : > { %v553_v52 = vsel %vm551_vm9, %v548_v48, %v550_v51 }
 0x194   : > { %v600_v53 = vpop.permute.xlu0 %599  ;;  %1809 = vmatpush.msk.msrb.mxu1 %vm2188_vm3, %v553_v52 }
 0x195   : > { %v603_v54 = vsel %vm601_vm10, %v1933_v45, %v600_v53 }
 0x196   : > { %659 = vmatpush.msrb.mxu1 %v603_v54 }
 0x19a   : > { %v533_v56 = vpop.permute.xlu1 %532  ;;  %v589_v4 = vpop.permute.xlu2 %588 }
 0x19b   : > { %v539_v57 = vsel %vm538_vm11, %v533_v56, %v535_v55 }
 0x19c   : > { %v537_v58 = vpop.permute.xlu0 %536  ;;  %1803 = vmatpush.msk.msrb.mxu0 %vm2204_vm7, %v539_v57 }
 0x19d   : > { %v540_v59 = vsel %vm538_vm11, %v535_v55, %v537_v58  ;;  %v1815_v58 = vld [vmem:[%s3030_s7 + $0x8] sm:$0xff] }
 0x19e   : > { %1810 = vmatpush.msk.msrb.mxu1 %vm2211_vm8, %v540_v59 }
 0x1a2   : > { %v520_v61 = vpop.permute.xlu1 %519 }
 0x1a3   : > { %v526_v62 = vsel %vm525_vm12, %v520_v61, %v522_v60 }
 0x1a4   : > { %v524_v63 = vpop.permute.xlu0 %523  ;;  %1804 = vmatpush.msk.msrb.mxu0 %vm2195_vm4, %v526_v62 }
 0x1a5   : > { %v527_v0 = vsel %vm525_vm12, %v522_v60, %v524_v63 }
 0x1a6   : > { %1811 = vmatpush.msk.msrb.mxu1 %vm2188_vm3, %v527_v0 }
 0x1aa   : > { %v1936_v1 = vpop.permute.xlu1 %1935 }
 0x1ab   : > { %v1938_v2 = vunpack.i.h.bf16 %v1936_v1  ;;  %v1937_v3 = vunpack.i.l.bf16 %v1936_v1 }
 0x1ac   : > { %v622_v8 = vpop.permute.xlu0 %621 }
 0x1ad   : > { %v591_v5 = vsel %vm590_vm13, %v1937_v3, %v1938_v2  ;;  %v592_v6 = vsel %vm590_vm13, %v1938_v2, %v589_v4 }
 0x1ae   : > { %642 = vmatpush.msrb.mxu0 %v591_v5  ;;  %662 = vmatpush.msrb.mxu1 %v592_v6 }
 0x1b0   : > { %1805 = vmatpush.msk.msrb.mxu0 %vm2204_vm7, %v2146_v17  ;;  %1812 = vmatpush.msk.msrb.mxu1 %vm2211_vm8, %v2143_v16 }
 0x1b1   : > { %1806 = vmatmul.msk.f32.vlgmr.msrb.gmra.mxu0 %vm624_vm14, %v617_v7  ;;  %1813 = vmatmul.msk.f32.vlgmr.msrb.gmra.mxu1 %vm624_vm14, %v617_v7 }
 0x22e   : > { %v645_v9 = vpop.f32.mrf.mxu0  ;;  %v665_v12 = vpop.f32.mrf.mxu1 }
 0x22f   : > { %v646_v13 = vadd.f32 %v645_v9, %v622_v8  ;;  %v666_v14 = vadd.f32 %v665_v12, %v622_v8 }
 0x231   : > { %v668_v15 = vmax.f32 %v646_v13, 0.0  ;;  %v669_v18 = vmax.f32 %v666_v14, 0.0 }
 0x233   : > { %674 = vrot.lane.b32.xlu2 %v669_v18, %s2046_s23  ;;  %672 = vrot.lane.b32.xlu1 %v668_v15, %s2046_s23  ;;  %v1814_v15 = vld [vmem:[%s3029_s6 + $0x8] sm:$0xff]  ;;  %v477_v18 = vpop.f32.mrf.mxu2 }
 0x28d   : > { %v675_v17 = vpop.permute.xlu2 %674 }
 0x28e   : > { %v681_v19 = vsel %vm508_vm1, %v675_v17, 0.0 }
 0x28f   : > { %738 = vrot.lane.b32.xlu2 %v681_v19, %s2047_s24 }
 0x2a5   : > { %v673_v16 = vpop.permute.xlu1 %672 }
 0x2a6   : > { %v2261_v20 = vsel %vm508_vm1, %v673_v16, %v675_v17  ;;  %v2264_v21 = vsel %vm508_vm1, 0.0, %v673_v16  ;;  %v497_v17 = vpop.f32.mrf.mxu3 }
 0x2a7   : > { %722 = vrot.lane.b32.xlu2 %v2264_v21, %s2049_s26  ;;  %734 = vrot.lane.b32.xlu0 %v2264_v21, %s2047_s24  ;;  %v1939_v28 = vpack.i.bf16 %v2261_v20, %v2264_v21 }
 0x2a8   : > { %736 = vrot.lane.b32.xlu1 %v2261_v20, %s2047_s24 }
 0x2af   : > { %710 = vrot.lane.b32.xlu2 %v2264_v21, %s2050_s27  ;;  %1940 = vrot.lane.b32.xlu0 %v1939_v28, %s2048_s25 }
 0x2b0   : > { %770 = vrot.lane.b32.xlu1 %v681_v19, %s2048_s25 }
 0x2b7   : > { %1945 = vrot.lane.b32.xlu2 %v1939_v28, %s2051_s28  ;;  %724 = vrot.lane.b32.xlu0 %v2261_v20, %s2049_s26 }
 0x2b8   : > { %726 = vrot.lane.b32.xlu1 %v681_v19, %s2049_s26 }
 0x2bf   : > { %700 = vrot.lane.b32.xlu2 %v2261_v20, %s2052_s29  ;;  %712 = vrot.lane.b32.xlu0 %v2261_v20, %s2050_s27 }
 0x2c0   : > { %714 = vrot.lane.b32.xlu1 %v681_v19, %s2050_s27 }
 0x2c7   : > { %688 = vrot.lane.b32.xlu2 %v2261_v20, %s2053_s30  ;;  %760 = vrot.lane.b32.xlu0 %v681_v19, %s2051_s28 }
 0x2c8   : > { %698 = vrot.lane.b32.xlu1 %v2264_v21, %s2052_s29 }
 0x2cf   : > { %750 = vrot.lane.b32.xlu2 %v681_v19, %s2054_s15  ;;  %702 = vrot.lane.b32.xlu0 %v681_v19, %s2052_s29 }
 0x2d0   : > { %686 = vrot.lane.b32.xlu1 %v2264_v21, %s2053_s30 }
 0x2d7   : > { %690 = vrot.lane.b32.xlu0 %v681_v19, %s2053_s30 }
 0x2d8   : > { %1950 = vrot.lane.b32.xlu1 %v1939_v28, %s2054_s15 }
 0x2df   : > { %454 = vperm.xlu0 %1923, %v451_v30  }
 0x2e0   : > { %782 = vperm.xlu1 %1954, %v1815_v58  }
 0x2e9   : > { %v739_v31 = vpop.permute.xlu2 %738 }
 0x301   : > { %v723_v32 = vpop.permute.xlu2 %722 }
 0x309   : > { %v711_v42 = vpop.permute.xlu2 %710 }
 0x311   : > { %v1946_v50 = vpop.permute.xlu2 %1945 }
 0x312   : > { %v1948_v51 = vunpack.i.h.bf16 %v1946_v50  ;;  %v1947_v52 = vunpack.i.l.bf16 %v1946_v50 }
 0x314   : > { %v762_v57 = vsel %vm601_vm10, %v1947_v52, %v1948_v51 }
 0x319   : > { %v735_v33 = vpop.permute.xlu0 %734  ;;  %v701_v59 = vpop.permute.xlu2 %700 }
 0x31a   : > { %v737_v34 = vpop.permute.xlu1 %736 }
 0x31b   : > { %v740_v35 = vsel %vm577_vm2, %v735_v33, %v737_v34  ;;  %v741_v36 = vsel %vm577_vm2, %v737_v34, %v739_v31 }
 0x31c   : > { %1816 = vmatpush.msk.msrb.mxu2 %vm2195_vm4, %v740_v35  ;;  %1823 = vmatpush.msk.msrb.mxu3 %vm2188_vm3, %v741_v36 }
 0x321   : > { %v1941_v37 = vpop.permute.xlu0 %1940  ;;  %v689_v1 = vpop.permute.xlu2 %688 }
 0x322   : > { %v1943_v38 = vunpack.i.h.bf16 %v1941_v37  ;;  %v1942_v40 = vunpack.i.l.bf16 %v1941_v37  ;;  %v771_v41 = vpop.permute.xlu1 %770 }
 0x324   : > { %v772_v44 = vsel %vm612_vm5, %v1942_v40, %v1943_v38  ;;  %v773_v45 = vsel %vm612_vm5, %v1943_v38, %v771_v41 }
 0x325   : > { %796 = vmatpush.msrb.mxu2 %v772_v44  ;;  %816 = vmatpush.msrb.mxu3 %v773_v45 }
 0x329   : > { %v725_v46 = vpop.permute.xlu0 %724  ;;  %v751_v12 = vpop.permute.xlu2 %750 }
 0x32a   : > { %v727_v47 = vpop.permute.xlu1 %726  ;;  %v728_v48 = vsel %vm564_vm6, %v723_v32, %v725_v46 }
 0x32b   : > { %1817 = vmatpush.msk.msrb.mxu2 %vm2204_vm7, %v728_v48  ;;  %v729_v49 = vsel %vm564_vm6, %v725_v46, %v727_v47 }
 0x32c   : > { %1824 = vmatpush.msk.msrb.mxu3 %vm2211_vm8, %v729_v49 }
 0x331   : > { %v713_v53 = vpop.permute.xlu0 %712 }
 0x332   : > { %v715_v54 = vpop.permute.xlu1 %714  ;;  %v716_v55 = vsel %vm551_vm9, %v711_v42, %v713_v53 }
 0x333   : > { %1818 = vmatpush.msk.msrb.mxu2 %vm2195_vm4, %v716_v55  ;;  %v717_v56 = vsel %vm551_vm9, %v713_v53, %v715_v54 }
 0x334   : > { %1825 = vmatpush.msk.msrb.mxu3 %vm2188_vm3, %v717_v56 }
 0x335   : > { %799 = vmatpush.msrb.mxu2 %v762_v57 }
 0x339   : > { %v761_v60 = vpop.permute.xlu0 %760 }
 0x33a   : > { %v699_v61 = vpop.permute.xlu1 %698  ;;  %v763_v62 = vsel %vm601_vm10, %v1948_v51, %v761_v60 }
 0x33b   : > { %v704_v63 = vsel %vm538_vm11, %v699_v61, %v701_v59  ;;  %819 = vmatpush.msrb.mxu3 %v763_v62 }
 0x33c   : > { %1819 = vmatpush.msk.msrb.mxu2 %vm2204_vm7, %v704_v63 }
 0x341   : > { %v703_v0 = vpop.permute.xlu0 %702 }
 0x342   : > { %v687_v2 = vpop.permute.xlu1 %686  ;;  %v705_v3 = vsel %vm538_vm11, %v701_v59, %v703_v0 }
 0x343   : > { %v692_v4 = vsel %vm525_vm12, %v687_v2, %v689_v1  ;;  %1826 = vmatpush.msk.msrb.mxu3 %vm2211_vm8, %v705_v3 }
 0x344   : > { %1820 = vmatpush.msk.msrb.mxu2 %vm2195_vm4, %v692_v4 }
 0x349   : > { %v691_v5 = vpop.permute.xlu0 %690 }
 0x34a   : > { %v1951_v6 = vpop.permute.xlu1 %1950  ;;  %v693_v7 = vsel %vm525_vm12, %v689_v1, %v691_v5 }
 0x34b   : > { %v1953_v8 = vunpack.i.h.bf16 %v1951_v6  ;;  %v1952_v9 = vunpack.i.l.bf16 %v1951_v6  ;;  %1827 = vmatpush.msk.msrb.mxu3 %vm2188_vm3, %v693_v7 }
 0x34d   : > { %v752_v13 = vsel %vm590_vm13, %v1952_v9, %v1953_v8  ;;  %v753_v14 = vsel %vm590_vm13, %v1953_v8, %v751_v12 }
 0x34e   : > { %802 = vmatpush.msrb.mxu2 %v752_v13  ;;  %822 = vmatpush.msrb.mxu3 %v753_v14 }
 0x350   : > { %1821 = vmatpush.msk.msrb.mxu2 %vm2204_vm7, %v2264_v21  ;;  %1828 = vmatpush.msk.msrb.mxu3 %vm2211_vm8, %v2261_v20 }
 0x351   : > { %1822 = vmatmul.msk.f32.vlgmr.msrb.gmra.mxu2 %vm624_vm14, %v1814_v15  ;;  %1829 = vmatmul.msk.f32.vlgmr.msrb.gmra.mxu3 %vm624_vm14, %v1814_v15  ;;  %v455_v19 = vpop.permute.xlu0 %454 }
 0x352   : > { %v2356_v16 = vadd.f32 %v477_v18, %v455_v19  ;;  %v2358_v22 = vadd.f32 %v497_v17, %v455_v19  ;;  %v783_v30 = vpop.permute.xlu1 %782 }
 0x354   : > { %v831_v23 = vmax.f32 %v2358_v22, 0.0  ;;  %v830_v25 = vmax.f32 %v2356_v16, 0.0 }
 0x356   : > { %836 = vrot.lane.b32.xlu0 %v831_v23, %s2046_s23  ;;  %834 = vrot.lane.b32.xlu2 %v830_v25, %s2046_s23 }
 0x3b0   : > { %v835_v21 = vpop.permute.xlu2 %834 }
 0x3b1   : > { %v2365_v20 = vsel %vm508_vm1, 0.0, %v835_v21 }
 0x3b2   : > { %848 = vrot.lane.b32.xlu1 %v2365_v20, %s2053_s30 }
 0x3c8   : > { %v837_v26 = vpop.permute.xlu0 %836 }
 0x3c9   : > { %v2370_v27 = vsel %vm508_vm1, %v835_v21, %v837_v26  ;;  %v2373_v28 = vsel %vm508_vm1, %v837_v26, 0.0 }
 0x3ca   : > { %852 = vrot.lane.b32.xlu0 %v2373_v28, %s2053_s30  ;;  %850 = vrot.lane.b32.xlu2 %v2370_v27, %s2053_s30  ;;  %v1955_v38 = vpack.i.bf16 %v2370_v27, %v2365_v20 }
 0x3cb   : > { %862 = vrot.lane.b32.xlu1 %v2370_v27, %s2052_s29 }
 0x3d2   : > { %860 = vrot.lane.b32.xlu0 %v2365_v20, %s2052_s29  ;;  %864 = vrot.lane.b32.xlu2 %v2373_v28, %s2052_s29 }
 0x3d3   : > { %874 = vrot.lane.b32.xlu1 %v2370_v27, %s2050_s27 }
 0x3d4   : > { %v805_v31 = vpop.f32.mrf.mxu2  ;;  %v825_v32 = vpop.f32.mrf.mxu3 }
 0x3d5   : > { %v806_v33 = vadd.f32 %v805_v31, %v783_v30  ;;  %v826_v34 = vadd.f32 %v825_v32, %v783_v30  ;;  %v1830_v30 = vld [vmem:[%s3029_s6 + $0x10] sm:$0xff] }
 0x3d7   : > { %v828_v35 = vadd.f32 %v806_v33, %v2356_v16  ;;  %v829_v36 = vadd.f32 %v826_v34, %v2358_v22 }
 0x3d9   : > { %1707 = vst [vmem:[%s2391_s16] sm:$0xff] %v828_v35  ;;  %v1385_v37 = vmax.f32 %v828_v35, 0.0  ;;  %v1386_v40 = vmax.f32 %v829_v36, 0.0 }
 0x3da   : > { %1708 = vst [vmem:[%s2391_s16 + $0x8] sm:$0xff] %v829_v36  ;;  %872 = vrot.lane.b32.xlu0 %v2365_v20, %s2050_s27  ;;  %876 = vrot.lane.b32.xlu2 %v2373_v28, %s2050_s27 }
 0x3db   : > { %886 = vrot.lane.b32.xlu1 %v2370_v27, %s2049_s26 }
 0x3e2   : > { %884 = vrot.lane.b32.xlu0 %v2365_v20, %s2049_s26  ;;  %888 = vrot.lane.b32.xlu2 %v2373_v28, %s2049_s26 }
 0x3e3   : > { %898 = vrot.lane.b32.xlu1 %v2370_v27, %s2047_s24 }
 0x3ea   : > { %896 = vrot.lane.b32.xlu0 %v2365_v20, %s2047_s24  ;;  %900 = vrot.lane.b32.xlu2 %v2373_v28, %s2047_s24 }
 0x3eb   : > { %1389 = vrot.lane.b32.xlu1 %v1385_v37, %s2046_s23 }
 0x3f2   : > { %1956 = vrot.lane.b32.xlu0 %v1955_v38, %s2048_s25  ;;  %1961 = vrot.lane.b32.xlu2 %v1955_v38, %s2051_s28 }
 0x3fa   : > { %1391 = vrot.lane.b32.xlu2 %v1386_v40, %s2046_s23 }
 0x402   : > { %1966 = vrot.lane.b32.xlu2 %v1955_v38, %s2054_s15 }
 0x424   : > { %v851_v41 = vpop.permute.xlu2 %850  ;;  %v849_v44 = vpop.permute.xlu1 %848 }
 0x425   : > { %v854_v26 = vsel %vm525_vm12, %v849_v44, %v851_v41 }
 0x42c   : > { %v865_v42 = vpop.permute.xlu2 %864 }
 0x434   : > { %v877_v45 = vpop.permute.xlu2 %876 }
 0x43c   : > { %v853_v46 = vpop.permute.xlu0 %852  ;;  %v889_v50 = vpop.permute.xlu2 %888 }
 0x43d   : > { %v2421_v47 = vsel %vm525_vm12, %v851_v41, %v853_v46  ;;  %v863_v48 = vpop.permute.xlu1 %862 }
 0x43e   : > { %v2424_v49 = vsel %vm538_vm11, %v863_v48, %v865_v42 }
 0x444   : > { %v861_v51 = vpop.permute.xlu0 %860  ;;  %v901_v54 = vpop.permute.xlu2 %900 }
 0x445   : > { %v875_v52 = vpop.permute.xlu1 %874  ;;  %v866_v19 = vsel %vm538_vm11, %v861_v51, %v863_v48 }
 0x446   : > { %v2427_v53 = vsel %vm551_vm9, %v875_v52, %v877_v45 }
 0x44c   : > { %v873_v55 = vpop.permute.xlu0 %872  ;;  %v2432_v58 = vpop.permute.xlu2 %1961 }
 0x44d   : > { %v887_v56 = vpop.permute.xlu1 %886  ;;  %v1964_v12 = vunpack.i.h.bf16 %v2432_v58  ;;  %v1963_v13 = vunpack.i.l.bf16 %v2432_v58  ;;  %v878_v15 = vsel %vm551_vm9, %v873_v55, %v875_v52 }
 0x44e   : > { %v2430_v57 = vsel %vm564_vm6, %v887_v56, %v889_v50 }
 0x44f   : > { %v924_v17 = vsel %vm601_vm10, %v1963_v13, %v1964_v12 }
 0x454   : > { %v885_v59 = vpop.permute.xlu0 %884  ;;  %v1392_v63 = vpop.permute.xlu2 %1391 }
 0x455   : > { %v899_v60 = vpop.permute.xlu1 %898  ;;  %v1398_v9 = vsel %vm508_vm1, %v1392_v63, 0.0  ;;  %v890_v14 = vsel %vm564_vm6, %v885_v59, %v887_v56 }
 0x456   : > { %v903_v61 = vsel %vm577_vm2, %v899_v60, %v901_v54 }
 0x457   : > { %1839 = vmatpush.msk.msra.mxu1 %vm2188_vm3, %v903_v61 }
 0x45c   : > { %v897_v62 = vpop.permute.xlu0 %896  ;;  %v2465_v18 = vpop.permute.xlu2 %1966 }
 0x45d   : > { %v902_v0 = vsel %vm577_vm2, %v897_v62, %v899_v60  ;;  %v1390_v1 = vpop.permute.xlu1 %1389  ;;  %v1969_v23 = vunpack.i.h.bf16 %v2465_v18  ;;  %v1968_v25 = vunpack.i.l.bf16 %v2465_v18 }
 0x45e   : > { %v2439_v2 = vsel %vm508_vm1, %v1390_v1, %v1392_v63  ;;  %v2442_v3 = vsel %vm508_vm1, 0.0, %v1390_v1  ;;  %1832 = vmatpush.msk.msra.mxu0 %vm2195_vm4, %v902_v0 }
 0x45f   : > { %1453 = vrot.lane.b32.xlu2 %v2439_v2, %s2047_s24  ;;  %v1975_v4 = vpack.i.bf16 %v2442_v3, %v2373_v28  ;;  %v1980_v21 = vpack.i.bf16 %v1398_v9, %v2439_v2  ;;  %v914_v28 = vsel %vm590_vm13, %v1968_v25, %v1969_v23 }
 0x461   : > { %1976 = vrot.lane.b32.xlu0 %v1975_v4, %s2051_s28  ;;  %1971 = vrot.lane.b32.xlu1 %v1975_v4, %s2048_s25 }
 0x464   : > { %v1957_v5 = vpop.permute.xlu0 %1956 }
 0x465   : > { %v1959_v6 = vunpack.i.h.bf16 %v1957_v5  ;;  %v1958_v7 = vunpack.i.l.bf16 %v1957_v5 }
 0x467   : > { %1439 = vrot.lane.b32.xlu2 %v2442_v3, %s2049_s26  ;;  %v934_v8 = vsel %vm612_vm5, %v1958_v7, %v1959_v6 }
 0x468   : > { %958 = vmatpush.msra.mxu0 %v934_v8 }
 0x469   : > { %1455 = vrot.lane.b32.xlu0 %v1398_v9, %s2047_s24  ;;  %1451 = vrot.lane.b32.xlu1 %v2442_v3, %s2047_s24 }
 0x46a   : > { %1833 = vmatpush.msk.msra.mxu0 %vm2204_vm7, %v890_v14 }
 0x46c   : > { %1834 = vmatpush.msk.msra.mxu0 %vm2195_vm4, %v878_v15 }
 0x46e   : > { %961 = vmatpush.msra.mxu0 %v924_v17 }
 0x46f   : > { %1429 = vrot.lane.b32.xlu2 %v2439_v2, %s2050_s27 }
 0x470   : > { %1835 = vmatpush.msk.msra.mxu0 %vm2204_vm7, %v866_v19 }
 0x471   : > { %1441 = vrot.lane.b32.xlu0 %v2439_v2, %s2049_s26  ;;  %1981 = vrot.lane.b32.xlu1 %v1980_v21, %s2048_s25 }
 0x472   : > { %1836 = vmatpush.msk.msra.mxu0 %vm2195_vm4, %v854_v26 }
 0x474   : > { %964 = vmatpush.msra.mxu0 %v914_v28 }
 0x476   : > { %1837 = vmatpush.msk.msra.mxu0 %vm2204_vm7, %v2365_v20  ;;  %v1831_v20 = vld [vmem:[%s3030_s7 + $0x10] sm:$0xff] }
 0x477   : > { %1415 = vrot.lane.b32.xlu2 %v2442_v3, %s2052_s29  ;;  %1838 = vmatmul.msk.f32.vlgmr.msra.gmra.mxu0 %vm624_vm14, %v1830_v30 }
 0x479   : > { %1986 = vrot.lane.b32.xlu0 %v1975_v4, %s2054_s15  ;;  %1443 = vrot.lane.b32.xlu1 %v1398_v9, %s2049_s26 }
 0x47f   : > { %1403 = vrot.lane.b32.xlu2 %v2442_v3, %s2053_s30 }
 0x481   : > { %1431 = vrot.lane.b32.xlu0 %v1398_v9, %s2050_s27  ;;  %1427 = vrot.lane.b32.xlu1 %v2442_v3, %s2050_s27 }
 0x487   : > { %1996 = vrot.lane.b32.xlu2 %v1980_v21, %s2054_s15 }
 0x489   : > { %1417 = vrot.lane.b32.xlu0 %v2439_v2, %s2052_s29  ;;  %1991 = vrot.lane.b32.xlu1 %v1980_v21, %s2051_s28 }
 0x491   : > { %1405 = vrot.lane.b32.xlu0 %v2439_v2, %s2053_s30  ;;  %1419 = vrot.lane.b32.xlu1 %v1398_v9, %s2052_s29 }
 0x499   : > { %944 = vperm.xlu0 %1923, %v1831_v20   ;;  %1407 = vrot.lane.b32.xlu1 %v1398_v9, %s2053_s30 }
 0x4b9   : > { %v1454_v31 = vpop.permute.xlu2 %1453 }
 0x4c1   : > { %v1440_v36 = vpop.permute.xlu2 %1439 }
 0x4c9   : > { %v1430_v44 = vpop.permute.xlu2 %1429 }
 0x4d1   : > { %v1416_v55 = vpop.permute.xlu2 %1415 }
 0x4d3   : > { %v1977_v32 = vpop.permute.xlu0 %1976  ;;  %v1972_v33 = vpop.permute.xlu1 %1971 }
 0x4d4   : > { %v1973_v34 = vunpack.i.l.bf16 %v1972_v33  ;;  %v1978_v37 = vunpack.i.l.bf16 %v1977_v32  ;;  %v1974_v48 = vunpack.i.h.bf16 %v1972_v33  ;;  %v1979_v4 = vunpack.i.h.bf16 %v1977_v32 }
 0x4d6   : > { %v935_v35 = vsel %vm612_vm5, %v1959_v6, %v1973_v34  ;;  %v925_v42 = vsel %vm601_vm10, %v1964_v12, %v1978_v37 }
 0x4d7   : > { %978 = vmatpush.msra.mxu1 %v935_v35 }
 0x4d9   : > { %1840 = vmatpush.msk.msra.mxu1 %vm2211_vm8, %v2430_v57 }
 0x4db   : > { %v1456_v38 = vpop.permute.xlu0 %1455  ;;  %v1452_v40 = vpop.permute.xlu1 %1451  ;;  %1841 = vmatpush.msk.msra.mxu1 %vm2188_vm3, %v2427_v53 }
 0x4dc   : > { %v1457_v41 = vsel %vm577_vm2, %v1452_v40, %v1454_v31  ;;  %v1458_v57 = vsel %vm577_vm2, %v1454_v31, %v1456_v38 }
 0x4dd   : > { %981 = vmatpush.msra.mxu1 %v925_v42  ;;  %1864 = vmatpush.msk.msrb.mxu0 %vm2195_vm4, %v1457_v41  ;;  %v1847_v42 = vld [vmem:[%s3030_s7 + $0x18] sm:$0xff] }
 0x4df   : > { %1842 = vmatpush.msk.msra.mxu1 %vm2211_vm8, %v2424_v49 }
 0x4e1   : > { %1843 = vmatpush.msk.msra.mxu1 %vm2188_vm3, %v2421_v47 }
 0x4e3   : > { %v1442_v45 = vpop.permute.xlu0 %1441  ;;  %v1982_v46 = vpop.permute.xlu1 %1981 }
 0x4e4   : > { %v1983_v50 = vunpack.i.l.bf16 %v1982_v46  ;;  %v1445_v52 = vsel %vm564_vm6, %v1440_v36, %v1442_v45  ;;  %v1984_v47 = vunpack.i.h.bf16 %v1982_v46 }
 0x4e6   : > { %v1489_v51 = vsel %vm612_vm5, %v1974_v48, %v1983_v50  ;;  %v1490_v61 = vsel %vm612_vm5, %v1983_v50, %v1984_v47 }
 0x4e7   : > { %1513 = vmatpush.msrb.mxu0 %v1489_v51 }
 0x4e9   : > { %1865 = vmatpush.msk.msrb.mxu0 %vm2204_vm7, %v1445_v52 }
 0x4eb   : > { %v1987_v53 = vpop.permute.xlu0 %1986  ;;  %v1444_v54 = vpop.permute.xlu1 %1443 }
 0x4ec   : > { %v1988_v49 = vunpack.i.l.bf16 %v1987_v53  ;;  %v1446_v62 = vsel %vm564_vm6, %v1442_v45, %v1444_v54  ;;  %v1989_v13 = vunpack.i.h.bf16 %v1987_v53 }
 0x4ee   : > { %v915_v56 = vsel %vm590_vm13, %v1969_v23, %v1988_v49 }
 0x4ef   : > { %984 = vmatpush.msra.mxu1 %v915_v56 }
 0x4f1   : > { %1844 = vmatpush.msk.msra.mxu1 %vm2211_vm8, %v2370_v27  ;;  %v1404_v27 = vpop.permute.xlu2 %1403 }
 0x4f2   : > { %1845 = vmatmul.msk.f32.vlgmr.msra.gmra.mxu1 %vm624_vm14, %v1830_v30 }
 0x4f3   : > { %1871 = vmatpush.msk.msrb.mxu1 %vm2188_vm3, %v1458_v57  ;;  %v1432_v58 = vpop.permute.xlu0 %1431  ;;  %v1428_v59 = vpop.permute.xlu1 %1427 }
 0x4f4   : > { %v1433_v60 = vsel %vm551_vm9, %v1428_v59, %v1430_v44  ;;  %v1434_v63 = vsel %vm551_vm9, %v1430_v44, %v1432_v58  ;;  %v967_v25 = vpop.f32.mrf.mxu0  ;;  %v1863_v44 = vld [vmem:[%s3030_s7 + $0x20] sm:$0xff] }
 0x4f5   : > { %1533 = vmatpush.msrb.mxu1 %v1490_v61  ;;  %1866 = vmatpush.msk.msrb.mxu0 %vm2195_vm4, %v1433_v60 }
 0x4f7   : > { %1872 = vmatpush.msk.msrb.mxu1 %vm2211_vm8, %v1446_v62 }
 0x4f9   : > { %1873 = vmatpush.msk.msrb.mxu1 %vm2188_vm3, %v1434_v63  ;;  %v1997_v12 = vpop.permute.xlu2 %1996 }
 0x4fa   : > { %v1998_v18 = vunpack.i.l.bf16 %v1997_v12  ;;  %v1999_v21 = vunpack.i.h.bf16 %v1997_v12 }
 0x4fb   : > { %v1418_v0 = vpop.permute.xlu0 %1417  ;;  %v1992_v1 = vpop.permute.xlu1 %1991 }
 0x4fc   : > { %v1994_v5 = vunpack.i.h.bf16 %v1992_v1  ;;  %v1993_v6 = vunpack.i.l.bf16 %v1992_v1  ;;  %v1421_v9 = vsel %vm538_vm11, %v1416_v55, %v1418_v0  ;;  %v1469_v23 = vsel %vm590_vm13, %v1989_v13, %v1998_v18 }
 0x4fd   : > { %v1470_v32 = vsel %vm590_vm13, %v1998_v18, %v1999_v21 }
 0x4fe   : > { %v1479_v7 = vsel %vm601_vm10, %v1979_v4, %v1993_v6  ;;  %v1480_v8 = vsel %vm601_vm10, %v1993_v6, %v1994_v5 }
 0x4ff   : > { %1516 = vmatpush.msrb.mxu0 %v1479_v7  ;;  %1536 = vmatpush.msrb.mxu1 %v1480_v8 }
 0x501   : > { %1867 = vmatpush.msk.msrb.mxu0 %vm2204_vm7, %v1421_v9 }
 0x503   : > { %v1406_v14 = vpop.permute.xlu0 %1405  ;;  %v1420_v15 = vpop.permute.xlu1 %1419 }
 0x504   : > { %v1409_v17 = vsel %vm525_vm12, %v1404_v27, %v1406_v14  ;;  %v1422_v19 = vsel %vm538_vm11, %v1418_v0, %v1420_v15 }
 0x505   : > { %1868 = vmatpush.msk.msrb.mxu0 %vm2195_vm4, %v1409_v17  ;;  %1874 = vmatpush.msk.msrb.mxu1 %vm2211_vm8, %v1422_v19 }
 0x507   : > { %1519 = vmatpush.msrb.mxu0 %v1469_v23 }
 0x509   : > { %1869 = vmatpush.msk.msrb.mxu0 %vm2204_vm7, %v2442_v3 }
 0x50b   : > { %v945_v26 = vpop.permute.xlu0 %944  ;;  %v1408_v28 = vpop.permute.xlu1 %1407 }
 0x50c   : > { %v968_v30 = vadd.f32 %v967_v25, %v945_v26  ;;  %v1410_v20 = vsel %vm525_vm12, %v1406_v14, %v1408_v28 }
 0x50d   : > { %1875 = vmatpush.msk.msrb.mxu1 %vm2188_vm3, %v1410_v20 }
 0x50e   : > { %v990_v31 = vmax.f32 %v968_v30, 0.0 }
 0x50f   : > { %1539 = vmatpush.msrb.mxu1 %v1470_v32  ;;  %v2690_v32 = vld [vmem:[%s3029_s6 + $0x18] sm:$0xff] }
 0x510   : > { %994 = vrot.lane.b32.xlu1 %v990_v31, %s2046_s23 }
 0x511   : > { %1876 = vmatpush.msk.msrb.mxu1 %vm2211_vm8, %v2439_v2  ;;  %v1862_v2 = vld [vmem:[%s3029_s6 + $0x20] sm:$0xff] }
 0x512   : > { %1870 = vmatmul.msk.f32.vlgmr.msrb.gmra.mxu0 %vm624_vm14, %v1862_v2  ;;  %1877 = vmatmul.msk.f32.vlgmr.msrb.gmra.mxu1 %vm624_vm14, %v1862_v2 }
 0x56f   : > { %v987_v3 = vpop.f32.mrf.mxu1 }
 0x570   : > { %v988_v33 = vadd.f32 %v987_v3, %v945_v26 }
 0x572   : > { %v991_v34 = vmax.f32 %v988_v33, 0.0 }
 0x574   : > { %996 = vrot.lane.b32.xlu2 %v991_v34, %s2046_s23 }
 0x582   : > { %v995_v35 = vpop.permute.xlu1 %994 }
 0x583   : > { %v2576_v36 = vsel %vm508_vm1, 0.0, %v995_v35 }
 0x584   : > { %1008 = vrot.lane.b32.xlu0 %v2576_v36, %s2053_s30 }
 0x58c   : > { %1020 = vrot.lane.b32.xlu0 %v2576_v36, %s2052_s29 }
 0x58f   : > { %v1522_v2 = vpop.f32.mrf.mxu0 }
 0x594   : > { %1032 = vrot.lane.b32.xlu0 %v2576_v36, %s2050_s27 }
 0x59c   : > { %1044 = vrot.lane.b32.xlu0 %v2576_v36, %s2049_s26 }
 0x5ce   : > { %v997_v37 = vpop.permute.xlu2 %996 }
 0x5cf   : > { %v2592_v38 = vsel %vm508_vm1, %v995_v35, %v997_v37  ;;  %v2595_v40 = vsel %vm508_vm1, %v997_v37, 0.0  ;;  %v1542_v37 = vpop.f32.mrf.mxu1 }
 0x5d0   : > { %1048 = vrot.lane.b32.xlu0 %v2595_v40, %s2049_s26  ;;  %1012 = vrot.lane.b32.xlu2 %v2595_v40, %s2053_s30  ;;  %v2005_v41 = vpack.i.bf16 %v2592_v38, %v2576_v36 }
 0x5d1   : > { %1010 = vrot.lane.b32.xlu1 %v2592_v38, %s2053_s30 }
 0x5d8   : > { %1060 = vrot.lane.b32.xlu0 %v2595_v40, %s2047_s24  ;;  %1024 = vrot.lane.b32.xlu2 %v2595_v40, %s2052_s29 }
 0x5d9   : > { %1022 = vrot.lane.b32.xlu1 %v2592_v38, %s2052_s29 }
 0x5e0   : > { %1036 = vrot.lane.b32.xlu2 %v2595_v40, %s2050_s27  ;;  %2006 = vrot.lane.b32.xlu0 %v2005_v41, %s2051_s28 }
 0x5e1   : > { %1034 = vrot.lane.b32.xlu1 %v2592_v38, %s2050_s27 }
 0x5e8   : > { %1104 = vperm.xlu0 %1923, %v1847_v42   ;;  %1046 = vrot.lane.b32.xlu2 %v2592_v38, %s2049_s26 }
 0x5e9   : > { %1499 = vperm.xlu1 %1954, %v1863_v44  }
 0x5f0   : > { %1058 = vrot.lane.b32.xlu2 %v2592_v38, %s2047_s24 }
 0x5f1   : > { %1056 = vrot.lane.b32.xlu1 %v2576_v36, %s2047_s24 }
 0x5f6   : > { %v1009_v45 = vpop.permute.xlu0 %1008 }
 0x5f8   : > { %1072 = vrot.lane.b32.xlu2 %v2595_v40, %s2054_s15 }
 0x5f9   : > { %2001 = vrot.lane.b32.xlu1 %v2005_v41, %s2054_s15 }
 0x5fe   : > { %v1021_v46 = vpop.permute.xlu0 %1020 }
 0x600   : > { %2011 = vrot.lane.b32.xlu2 %v2005_v41, %s2048_s25 }
 0x601   : > { %1082 = vrot.lane.b32.xlu1 %v2595_v40, %s2051_s28 }
 0x606   : > { %v1033_v50 = vpop.permute.xlu0 %1032 }
 0x608   : > { %1154 = vrot.lane.b32.xlu2 %v2136_v11, %s2046_s23 }
 0x609   : > { %1152 = vrot.lane.b32.xlu1 %v2134_v10, %s2046_s23 }
 0x60e   : > { %v1045_v52 = vpop.permute.xlu0 %1044 }
 0x62a   : > { %v1013_v48 = vpop.permute.xlu2 %1012 }
 0x632   : > { %v1025_v51 = vpop.permute.xlu2 %1024 }
 0x63a   : > { %v1037_v53 = vpop.permute.xlu2 %1036 }
 0x642   : > { %v1049_v54 = vpop.permute.xlu0 %1048  ;;  %v1047_v49 = vpop.permute.xlu2 %1046 }
 0x643   : > { %v2639_v55 = vsel %vm564_vm6, %v1047_v49, %v1049_v54  ;;  %v1011_v56 = vpop.permute.xlu1 %1010  ;;  %v1050_v14 = vsel %vm564_vm6, %v1045_v52, %v1047_v49 }
 0x644   : > { %v2642_v47 = vsel %vm525_vm12, %v1011_v56, %v1013_v48  ;;  %v1014_v30 = vsel %vm525_vm12, %v1009_v45, %v1011_v56 }
 0x64a   : > { %v1061_v57 = vpop.permute.xlu0 %1060  ;;  %v1059_v58 = vpop.permute.xlu2 %1058 }
 0x64b   : > { %v1063_v59 = vsel %vm577_vm2, %v1059_v58, %v1061_v57  ;;  %v1023_v60 = vpop.permute.xlu1 %1022 }
 0x64c   : > { %v2646_v61 = vsel %vm538_vm11, %v1023_v60, %v1025_v51  ;;  %1855 = vmatpush.msk.msra.mxu3 %vm2188_vm3, %v1063_v59  ;;  %v1026_v21 = vsel %vm538_vm11, %v1021_v46, %v1023_v60 }
 0x652   : > { %v1073_v62 = vpop.permute.xlu2 %1072  ;;  %v2007_v12 = vpop.permute.xlu0 %2006 }
 0x653   : > { %v1035_v27 = vpop.permute.xlu1 %1034  ;;  %v2009_v15 = vunpack.i.h.bf16 %v2007_v12  ;;  %v2008_v18 = vunpack.i.l.bf16 %v2007_v12 }
 0x654   : > { %v2651_v63 = vsel %vm551_vm9, %v1035_v27, %v1037_v53  ;;  %v1038_v17 = vsel %vm551_vm9, %v1033_v50, %v1035_v27 }
 0x655   : > { %v1084_v25 = vsel %vm601_vm10, %v2008_v18, %v2009_v15 }
 0x65a   : > { %v2653_v0 = vpop.permute.xlu2 %2011  ;;  %v2716_v45 = vpop.permute.xlu0 %1104 }
 0x65b   : > { %v1500_v1 = vpop.permute.xlu1 %1499  ;;  %v2014_v4 = vunpack.i.h.bf16 %v2653_v0  ;;  %v2013_v5 = vunpack.i.l.bf16 %v2653_v0 }
 0x65c   : > { %v1543_v41 = vadd.f32 %v1542_v37, %v1500_v1 }
 0x65d   : > { %v1094_v13 = vsel %vm612_vm5, %v2013_v5, %v2014_v4 }
 0x65e   : > { %v1546_v44 = vmax.f32 %v1543_v41, 0.0 }
 0x662   : > { %v1155_v6 = vpop.permute.xlu2 %1154 }
 0x663   : > { %v2658_v7 = vsel %vm508_vm1, %v1155_v6, 0.0  ;;  %v1057_v8 = vpop.permute.xlu1 %1056 }
 0x664   : > { %v1062_v9 = vsel %vm577_vm2, %v1057_v8, %v1059_v58  ;;  %1172 = vrot.lane.b32.xlu2 %v2658_v7, %s2054_s15 }
 0x665   : > { %1848 = vmatpush.msk.msra.mxu2 %vm2195_vm4, %v1062_v9 }
 0x667   : > { %1118 = vmatpush.msra.mxu2 %v1094_v13 }
 0x669   : > { %1849 = vmatpush.msk.msra.mxu2 %vm2204_vm7, %v1050_v14 }
 0x66b   : > { %1850 = vmatpush.msk.msra.mxu2 %vm2195_vm4, %v1038_v17  ;;  %v2002_v19 = vpop.permute.xlu1 %2001 }
 0x66c   : > { %v2004_v23 = vunpack.i.h.bf16 %v2002_v19  ;;  %1184 = vrot.lane.b32.xlu2 %v2658_v7, %s2053_s30  ;;  %v2003_v26 = vunpack.i.l.bf16 %v2002_v19 }
 0x66d   : > { %1121 = vmatpush.msra.mxu2 %v1084_v25 }
 0x66e   : > { %v2679_v28 = vsel %vm590_vm13, %v2004_v23, %v1073_v62  ;;  %v1074_v20 = vsel %vm590_vm13, %v2003_v26, %v2004_v23 }
 0x66f   : > { %1851 = vmatpush.msk.msra.mxu2 %vm2204_vm7, %v1026_v21 }
 0x671   : > { %1852 = vmatpush.msk.msra.mxu2 %vm2195_vm4, %v1014_v30 }
 0x673   : > { %v1083_v31 = vpop.permute.xlu1 %1082  ;;  %1124 = vmatpush.msra.mxu2 %v1074_v20 }
 0x674   : > { %v2693_v3 = vsel %vm601_vm10, %v2009_v15, %v1083_v31 }
 0x675   : > { %1853 = vmatpush.msk.msra.mxu2 %vm2204_vm7, %v2576_v36  ;;  %v1523_v36 = vadd.f32 %v1522_v2, %v1500_v1 }
 0x676   : > { %1854 = vmatmul.msk.f32.vlgmr.msra.gmra.mxu2 %vm624_vm14, %v2690_v32 }
 0x677   : > { %v1545_v42 = vmax.f32 %v1523_v36, 0.0 }
 0x67b   : > { %v1153_v33 = vpop.permute.xlu1 %1152 }
 0x67c   : > { %v2701_v34 = vsel %vm508_vm1, %v1153_v33, %v1155_v6  ;;  %v2704_v35 = vsel %vm508_vm1, 0.0, %v1153_v33 }
 0x67d   : > { %1168 = vrot.lane.b32.xlu0 %v2704_v35, %s2054_s15  ;;  %1170 = vrot.lane.b32.xlu1 %v2701_v34, %s2054_s15  ;;  %v1162_v53 = vsel %vm2204_vm7, %v2704_v35, 0.0  ;;  %v1163_v54 = vsel %vm2211_vm8, %v2701_v34, 0.0 }
 0x67e   : > { %v1164_v56 = vadd.f32 %v1162_v53, %v2134_v10  ;;  %v1165_v57 = vadd.f32 %v1163_v54, %v2136_v11 }
 0x685   : > { %1180 = vrot.lane.b32.xlu0 %v2704_v35, %s2053_s30  ;;  %1182 = vrot.lane.b32.xlu1 %v2701_v34, %s2053_s30 }
 0x68d   : > { %1551 = vrot.lane.b32.xlu1 %v1546_v44, %s2046_s23  ;;  %1549 = vrot.lane.b32.xlu0 %v1545_v42, %s2046_s23 }
 0x6be   : > { %v1173_v46 = vpop.permute.xlu2 %1172 }
 0x6c6   : > { %v1185_v49 = vpop.permute.xlu2 %1184 }
 0x6ef   : > { %v1169_v48 = vpop.permute.xlu0 %1168  ;;  %v1171_v50 = vpop.permute.xlu1 %1170 }
 0x6f0   : > { %v1174_v51 = vsel %vm590_vm13, %v1169_v48, %v1171_v50  ;;  %v1175_v52 = vsel %vm590_vm13, %v1171_v50, %v1173_v46 }
 0x6f1   : > { %v1178_v60 = vadd.f32 %v1174_v51, %v1164_v56  ;;  %v1179_v62 = vadd.f32 %v1175_v52, %v1165_v57 }
 0x6f7   : > { %v1181_v58 = vpop.permute.xlu0 %1180  ;;  %v1183_v59 = vpop.permute.xlu1 %1182 }
 0x6f8   : > { %v1186_v27 = vsel %vm525_vm12, %v1181_v58, %v1183_v59  ;;  %v1187_v1 = vsel %vm525_vm12, %v1183_v59, %v1185_v49 }
 0x6f9   : > { %v1190_v5 = vsel %vm2195_vm4, %v1186_v27, 0.0  ;;  %v1191_v6 = vsel %vm2188_vm3, %v1187_v1, 0.0 }
 0x6fa   : > { %v2734_v8 = vadd.f32 %v1190_v5, %v1178_v60  ;;  %v2736_v9 = vadd.f32 %v1191_v6, %v1179_v62 }
 0x6ff   : > { %v1552_v10 = vpop.permute.xlu1 %1551  ;;  %v1550_v11 = vpop.permute.xlu0 %1549 }
 0x700   : > { %v2739_v12 = vsel %vm508_vm1, %v1550_v11, %v1552_v10  ;;  %v2742_v13 = vsel %vm508_vm1, 0.0, %v1550_v11  ;;  %v1558_v15 = vsel %vm508_vm1, %v1552_v10, 0.0 }
 0x701   : > { %1611 = vrot.lane.b32.xlu0 %v2742_v13, %s2047_s24  ;;  %1613 = vrot.lane.b32.xlu1 %v2739_v12, %s2047_s24  ;;  %v2015_v14 = vpack.i.bf16 %v2742_v13, %v2595_v40  ;;  %v2020_v18 = vpack.i.bf16 %v1558_v15, %v2739_v12  ;;  %v2025_v40 = vpack.i.bf16 %v2739_v12, %v2742_v13 }
 0x703   : > { %2016 = vrot.lane.b32.xlu2 %v2015_v14, %s2048_s25 }
 0x709   : > { %2021 = vrot.lane.b32.xlu0 %v2020_v18, %s2048_s25  ;;  %1599 = vrot.lane.b32.xlu1 %v2742_v13, %s2049_s26 }
 0x70b   : > { %1615 = vrot.lane.b32.xlu2 %v1558_v15, %s2047_s24 }
 0x711   : > { %1603 = vrot.lane.b32.xlu0 %v1558_v15, %s2049_s26  ;;  %1587 = vrot.lane.b32.xlu1 %v2742_v13, %s2050_s27 }
 0x713   : > { %1601 = vrot.lane.b32.xlu2 %v2739_v12, %s2049_s26 }
 0x719   : > { %1591 = vrot.lane.b32.xlu0 %v1558_v15, %s2050_s27  ;;  %2026 = vrot.lane.b32.xlu1 %v2025_v40, %s2051_s28 }
 0x71b   : > { %1589 = vrot.lane.b32.xlu2 %v2739_v12, %s2050_s27 }
 0x721   : > { %1575 = vrot.lane.b32.xlu0 %v2742_v13, %s2052_s29  ;;  %1577 = vrot.lane.b32.xlu1 %v2739_v12, %s2052_s29 }
 0x723   : > { %1637 = vrot.lane.b32.xlu2 %v1558_v15, %s2051_s28 }
 0x729   : > { %1563 = vrot.lane.b32.xlu0 %v2742_v13, %s2053_s30  ;;  %1565 = vrot.lane.b32.xlu1 %v2739_v12, %s2053_s30 }
 0x72b   : > { %1579 = vrot.lane.b32.xlu2 %v1558_v15, %s2052_s29 }
 0x731   : > { %2031 = vrot.lane.b32.xlu0 %v2025_v40, %s2054_s15  ;;  %1627 = vrot.lane.b32.xlu1 %v1558_v15, %s2054_s15 }
 0x733   : > { %1567 = vrot.lane.b32.xlu2 %v1558_v15, %s2053_s30 }
 0x739   : > { %1196 = vrot.lane.b32.xlu0 %v2701_v34, %s2052_s29  ;;  %1198 = vrot.lane.b32.xlu1 %v2658_v7, %s2052_s29 }
 0x73b   : > { %1194 = vrot.lane.b32.xlu2 %v2704_v35, %s2052_s29 }
 0x741   : > { %1210 = vrot.lane.b32.xlu0 %v2701_v34, %s2050_s27  ;;  %1212 = vrot.lane.b32.xlu1 %v2658_v7, %s2050_s27 }
 0x743   : > { %1208 = vrot.lane.b32.xlu2 %v2704_v35, %s2050_s27 }
 0x749   : > { %1224 = vrot.lane.b32.xlu0 %v2701_v34, %s2049_s26  ;;  %1273 = vrot.lane.b32.xlu1 %v2356_v16, %s2046_s23 }
 0x74b   : > { %1222 = vrot.lane.b32.xlu2 %v2704_v35, %s2049_s26 }
 0x751   : > { %1226 = vrot.lane.b32.xlu0 %v2658_v7, %s2049_s26  ;;  %1236 = vrot.lane.b32.xlu1 %v2704_v35, %s2048_s25 }
 0x753   : > { %1275 = vrot.lane.b32.xlu2 %v2358_v22, %s2046_s23 }
 0x759   : > { %1240 = vrot.lane.b32.xlu0 %v2658_v7, %s2048_s25  ;;  %1248 = vrot.lane.b32.xlu1 %v2704_v35, %s2047_s24 }
 0x75b   : > { %1238 = vrot.lane.b32.xlu2 %v2701_v34, %s2048_s25 }
 0x75d   : > { %v2017_v17 = vpop.permute.xlu2 %2016 }
 0x75e   : > { %v2018_v19 = vunpack.i.l.bf16 %v2017_v17  ;;  %v2019_v26 = vunpack.i.h.bf16 %v2017_v17 }
 0x760   : > { %v1095_v23 = vsel %vm612_vm5, %v2014_v4, %v2018_v19 }
 0x761   : > { %1138 = vmatpush.msra.mxu3 %v1095_v23  ;;  %1252 = vrot.lane.b32.xlu0 %v2658_v7, %s2047_s24 }
 0x763   : > { %1856 = vmatpush.msk.msra.mxu3 %vm2211_vm8, %v2639_v55  ;;  %1250 = vrot.lane.b32.xlu2 %v2701_v34, %s2047_s24 }
 0x765   : > { %v1616_v25 = vpop.permute.xlu2 %1615  ;;  %1857 = vmatpush.msk.msra.mxu3 %vm2188_vm3, %v2651_v63 }
 0x767   : > { %1141 = vmatpush.msra.mxu3 %v2693_v3 }
 0x769   : > { %1858 = vmatpush.msk.msra.mxu3 %vm2211_vm8, %v2646_v61 }
 0x76b   : > { %1859 = vmatpush.msk.msra.mxu3 %vm2188_vm3, %v2642_v47 }
 0x76d   : > { %1144 = vmatpush.msra.mxu3 %v2679_v28  ;;  %v1602_v55 = vpop.permute.xlu2 %1601 }
 0x76f   : > { %1860 = vmatpush.msk.msra.mxu3 %vm2211_vm8, %v2592_v38 }
 0x770   : > { %1861 = vmatmul.msk.f32.vlgmr.msra.gmra.mxu3 %vm624_vm14, %v2690_v32 }
 0x773   : > { %v1612_v63 = vpop.permute.xlu0 %1611  ;;  %v1614_v0 = vpop.permute.xlu1 %1613 }
 0x774   : > { %v1617_v4 = vsel %vm577_vm2, %v1612_v63, %v1614_v0  ;;  %v1618_v61 = vsel %vm577_vm2, %v1614_v0, %v1616_v25 }
 0x775   : > { %v1590_v7 = vpop.permute.xlu2 %1589  ;;  %1880 = vmatpush.msk.msrb.mxu2 %vm2195_vm4, %v1617_v4  ;;  %1887 = vmatpush.msk.msrb.mxu3 %vm2188_vm3, %v1618_v61 }
 0x77b   : > { %v2022_v47 = vpop.permute.xlu0 %2021  ;;  %v1600_v21 = vpop.permute.xlu1 %1599 }
 0x77c   : > { %v2024_v38 = vunpack.i.h.bf16 %v2022_v47  ;;  %v2023_v28 = vunpack.i.l.bf16 %v2022_v47  ;;  %v1605_v32 = vsel %vm564_vm6, %v1600_v21, %v1602_v55 }
 0x77d   : > { %v1638_v30 = vpop.permute.xlu2 %1637 }
 0x77e   : > { %v1649_v20 = vsel %vm612_vm5, %v2019_v26, %v2023_v28  ;;  %v1650_v31 = vsel %vm612_vm5, %v2023_v28, %v2024_v38 }
 0x77f   : > { %1673 = vmatpush.msrb.mxu2 %v1649_v20  ;;  %1693 = vmatpush.msrb.mxu3 %v1650_v31  ;;  %v380_v20 = vld [vmem:[%s3031_s8] sm:$0x3] }
 0x781   : > { %1881 = vmatpush.msk.msrb.mxu2 %vm2204_vm7, %v1605_v32 }
 0x783   : > { %v1604_v3 = vpop.permute.xlu0 %1603  ;;  %v1588_v33 = vpop.permute.xlu1 %1587 }
 0x784   : > { %v1606_v34 = vsel %vm564_vm6, %v1602_v55, %v1604_v3  ;;  %v1593_v35 = vsel %vm551_vm9, %v1588_v33, %v1590_v7 }
 0x785   : > { %v1580_v2 = vpop.permute.xlu2 %1579  ;;  %1882 = vmatpush.msk.msrb.mxu2 %vm2195_vm4, %v1593_v35  ;;  %1888 = vmatpush.msk.msrb.mxu3 %vm2211_vm8, %v1606_v34  ;;  %v1263_v34 = vperm.slane %v380_v20, 0  ;;  %v1127_v35 = vpop.f32.mrf.mxu2 }
 0x78b   : > { %v1592_v37 = vpop.permute.xlu0 %1591  ;;  %v2027_v36 = vpop.permute.xlu1 %2026 }
 0x78c   : > { %v1594_v41 = vsel %vm551_vm9, %v1590_v7, %v1592_v37  ;;  %v2029_v42 = vunpack.i.h.bf16 %v2027_v36  ;;  %v2028_v44 = vunpack.i.l.bf16 %v2027_v36  ;;  %v1128_v36 = vadd.f32 %v1127_v35, %v2716_v45 }
 0x78d   : > { %v1568_v46 = vpop.permute.xlu2 %1567  ;;  %1889 = vmatpush.msk.msrb.mxu3 %vm2188_vm3, %v1594_v41 }
 0x78e   : > { %v1639_v48 = vsel %vm601_vm10, %v2028_v44, %v2029_v42  ;;  %v1640_v50 = vsel %vm601_vm10, %v2029_v42, %v1638_v30 }
 0x78f   : > { %1676 = vmatpush.msrb.mxu2 %v1639_v48  ;;  %1696 = vmatpush.msrb.mxu3 %v1640_v50 }
 0x793   : > { %v1576_v51 = vpop.permute.xlu0 %1575  ;;  %v1578_v52 = vpop.permute.xlu1 %1577 }
 0x794   : > { %v1581_v53 = vsel %vm538_vm11, %v1576_v51, %v1578_v52  ;;  %v1582_v54 = vsel %vm538_vm11, %v1578_v52, %v1580_v2 }
 0x795   : > { %v1195_v49 = vpop.permute.xlu2 %1194  ;;  %1883 = vmatpush.msk.msrb.mxu2 %vm2204_vm7, %v1581_v53  ;;  %1890 = vmatpush.msk.msrb.mxu3 %vm2211_vm8, %v1582_v54 }
 0x79b   : > { %v1564_v56 = vpop.permute.xlu0 %1563  ;;  %v1566_v57 = vpop.permute.xlu1 %1565 }
 0x79c   : > { %v1569_v58 = vsel %vm525_vm12, %v1564_v56, %v1566_v57  ;;  %v1570_v59 = vsel %vm525_vm12, %v1566_v57, %v1568_v46 }
 0x79d   : > { %v1209_v60 = vpop.permute.xlu2 %1208  ;;  %1884 = vmatpush.msk.msrb.mxu2 %vm2195_vm4, %v1569_v58  ;;  %1891 = vmatpush.msk.msrb.mxu3 %vm2188_vm3, %v1570_v59 }
 0x7a3   : > { %v2032_v62 = vpop.permute.xlu0 %2031  ;;  %v1628_v27 = vpop.permute.xlu1 %1627 }
 0x7a4   : > { %v2034_v1 = vunpack.i.h.bf16 %v2032_v62  ;;  %v2033_v5 = vunpack.i.l.bf16 %v2032_v62 }
 0x7a5   : > { %v1223_v6 = vpop.permute.xlu2 %1222 }
 0x7a6   : > { %v1629_v10 = vsel %vm590_vm13, %v2033_v5, %v2034_v1  ;;  %v1630_v11 = vsel %vm590_vm13, %v2034_v1, %v1628_v27  ;;  %v1264_v1 = vperm.slane %v380_v20, 1  ;;  %v1879_v5 = vld [vmem:[%s3030_s7 + $0x28] sm:$0xff] }
 0x7a7   : > { %1679 = vmatpush.msrb.mxu2 %v1629_v10  ;;  %1699 = vmatpush.msrb.mxu3 %v1630_v11 }
 0x7a9   : > { %1885 = vmatpush.msk.msrb.mxu2 %vm2204_vm7, %v2742_v13  ;;  %1892 = vmatpush.msk.msrb.mxu3 %vm2211_vm8, %v2739_v12  ;;  %v1878_v12 = vld [vmem:[%s3029_s6 + $0x28] sm:$0xff] }
 0x7aa   : > { %1886 = vmatmul.msk.f32.vlgmr.msrb.gmra.mxu2 %vm624_vm14, %v1878_v12  ;;  %1893 = vmatmul.msk.f32.vlgmr.msrb.gmra.mxu3 %vm624_vm14, %v1878_v12 }
 0x7ab   : > { %v1199_v14 = vpop.permute.xlu1 %1198  ;;  %v1197_v15 = vpop.permute.xlu0 %1196 }
 0x7ac   : > { %v1200_v55 = vsel %vm538_vm11, %v1195_v49, %v1197_v15  ;;  %v1201_v48 = vsel %vm538_vm11, %v1197_v15, %v1199_v14 }
 0x7ad   : > { %v1276_v18 = vpop.permute.xlu2 %1275  ;;  %v1204_v61 = vsel %vm2204_vm7, %v1200_v55, 0.0  ;;  %v1205_v51 = vsel %vm2211_vm8, %v1201_v48, 0.0 }
 0x7ae   : > { %v1282_v40 = vsel %vm508_vm1, %v1276_v18, -inf  ;;  %v1206_v26 = vadd.f32 %v1204_v61, %v2734_v8  ;;  %v1207_v49 = vadd.f32 %v1205_v51, %v2736_v9 }
 0x7af   : > { %1293 = vrot.lane.b32.xlu0 %v1282_v40, %s2054_s15 }
 0x7b3   : > { %v1213_v17 = vpop.permute.xlu1 %1212  ;;  %v1211_v19 = vpop.permute.xlu0 %1210 }
 0x7b4   : > { %v1214_v4 = vsel %vm551_vm9, %v1209_v60, %v1211_v19  ;;  %v1215_v50 = vsel %vm551_vm9, %v1211_v19, %v1213_v17 }
 0x7b5   : > { %v1239_v63 = vpop.permute.xlu2 %1238  ;;  %v1218_v21 = vsel %vm2195_vm4, %v1214_v4, 0.0  ;;  %v1219_v53 = vsel %vm2188_vm3, %v1215_v50, 0.0 }
 0x7b6   : > { %v1220_v28 = vadd.f32 %v1218_v21, %v1206_v26  ;;  %v1221_v57 = vadd.f32 %v1219_v53, %v1207_v49 }
 0x7b7   : > { %1305 = vrot.lane.b32.xlu0 %v1282_v40, %s2053_s30 }
 0x7bb   : > { %v1274_v23 = vpop.permute.xlu1 %1273  ;;  %v1225_v0 = vpop.permute.xlu0 %1224 }
 0x7bc   : > { %v2883_v25 = vsel %vm508_vm1, %v1274_v23, %v1276_v18  ;;  %v2886_v13 = vsel %vm508_vm1, -inf, %v1274_v23  ;;  %v1228_v47 = vsel %vm564_vm6, %v1223_v6, %v1225_v0 }
 0x7bd   : > { %1289 = vrot.lane.b32.xlu1 %v2886_v13, %s2054_s15  ;;  %1291 = vrot.lane.b32.xlu2 %v2883_v25, %s2054_s15  ;;  %v1232_v38 = vsel %vm2204_vm7, %v1228_v47, 0.0  ;;  %v1251_v32 = vpop.permute.xlu2 %1250 }
 0x7be   : > { %v1234_v31 = vadd.f32 %v1232_v38, %v1220_v28 }
 0x7bf   : > { %1319 = vrot.lane.b32.xlu0 %v1282_v40, %s2052_s29 }
 0x7c3   : > { %v1237_v7 = vpop.permute.xlu1 %1236  ;;  %v1227_v44 = vpop.permute.xlu0 %1226 }
 0x7c4   : > { %v1242_v30 = vsel %vm612_vm5, %v1237_v7, %v1239_v63  ;;  %v1229_v52 = vsel %vm564_vm6, %v1225_v0, %v1227_v44  ;;  %v1283_v44 = vsel %vm2204_vm7, %v2886_v13, -inf }
 0x7c5   : > { %1301 = vrot.lane.b32.xlu1 %v2886_v13, %s2053_s30  ;;  %1303 = vrot.lane.b32.xlu2 %v2883_v25, %s2053_s30  ;;  %v1246_v33 = vadd.f32 %v1242_v30, %v1234_v31  ;;  %v1233_v56 = vsel %vm2211_vm8, %v1229_v52, 0.0 }
 0x7c6   : > { %v1235_v60 = vadd.f32 %v1233_v56, %v1221_v57 }
 0x7c7   : > { %1333 = vrot.lane.b32.xlu0 %v1282_v40, %s2050_s27 }
 0x7cb   : > { %v1249_v3 = vpop.permute.xlu1 %1248  ;;  %v1241_v46 = vpop.permute.xlu0 %1240 }
 0x7cc   : > { %v1254_v8 = vsel %vm577_vm2, %v1249_v3, %v1251_v32  ;;  %v1243_v59 = vsel %vm612_vm5, %v1239_v63, %v1241_v46 }
 0x7cd   : > { %v1258_v2 = vsel %vm2195_vm4, %v1254_v8, 0.0  ;;  %1315 = vrot.lane.b32.xlu1 %v2886_v13, %s2052_s29  ;;  %1317 = vrot.lane.b32.xlu2 %v2883_v25, %s2052_s29  ;;  %v1247_v9 = vadd.f32 %v1243_v59, %v1235_v60  ;;  %v2035_v59 = vld [vmem:[%s2391_s16 + $0x8] sm:$0xff] }
 0x7ce   : > { %v1260_v37 = vadd.f32 %v1258_v2, %v1246_v33 }
 0x7cf   : > { %1347 = vrot.lane.b32.xlu0 %v1282_v40, %s2049_s26 }
 0x7d0   : > { %v1267_v41 = vmul.f32 %v1263_v34, %v1260_v37 }
 0x7d2   : > { %v2926_v42 = vadd.f32 %v1267_v41, %v1128_v36 }
 0x7d3   : > { %v1253_v54 = vpop.permute.xlu0 %1252 }
 0x7d4   : > { %1894 = vst [vmem:[%s2391_s16 + $0x10] sm:$0xff] %v2926_v42  ;;  %v1255_v58 = vsel %vm577_vm2, %v1251_v32, %v1253_v54  ;;  %v1285_v54 = vmax.f32 %v2356_v16, %v1283_v44 }
 0x7d5   : > { %1329 = vrot.lane.b32.xlu1 %v2886_v13, %s2050_s27  ;;  %1331 = vrot.lane.b32.xlu2 %v2883_v25, %s2050_s27  ;;  %v1259_v62 = vsel %vm2188_vm3, %v1255_v58, 0.0 }
 0x7d6   : > { %v1261_v27 = vadd.f32 %v1259_v62, %v1247_v9 }
 0x7d7   : > { %1361 = vrot.lane.b32.xlu0 %v1282_v40, %s2048_s25 }
 0x7d8   : > { %v1268_v11 = vmul.f32 %v1264_v1, %v1261_v27 }
 0x7dd   : > { %1343 = vrot.lane.b32.xlu1 %v2886_v13, %s2049_s26  ;;  %1345 = vrot.lane.b32.xlu2 %v2883_v25, %s2049_s26 }
 0x7df   : > { %1373 = vrot.lane.b32.xlu0 %v1282_v40, %s2047_s24 }
 0x7e5   : > { %1357 = vrot.lane.b32.xlu1 %v2886_v13, %s2048_s25  ;;  %1359 = vrot.lane.b32.xlu2 %v2883_v25, %s2048_s25 }
 0x7ed   : > { %1369 = vrot.lane.b32.xlu1 %v2886_v13, %s2047_s24  ;;  %1371 = vrot.lane.b32.xlu2 %v2883_v25, %s2047_s24 }
 0x7f3   : > { %v1147_v6 = vpop.f32.mrf.mxu3 }
 0x7f4   : > { %v1148_v10 = vadd.f32 %v1147_v6, %v2716_v45  ;;  %v1284_v45 = vsel %vm2211_vm8, %v2883_v25, -inf }
 0x7f5   : > { %1659 = vperm.xlu1 %1954, %v1879_v5   ;;  %v1286_v26 = vmax.f32 %v2358_v22, %v1284_v45 }
 0x7f6   : > { %v2966_v14 = vadd.f32 %v1268_v11, %v1148_v10 }
 0x7f8   : > { %1895 = vst [vmem:[%s2391_s16 + $0x18] sm:$0xff] %v2966_v14 }
 0x817   : > { %v1292_v15 = vpop.permute.xlu2 %1291 }
 0x81f   : > { %v1304_v18 = vpop.permute.xlu2 %1303 }
 0x821   : > { %v1294_v40 = vpop.permute.xlu0 %1293 }
 0x822   : > { %v1296_v21 = vsel %vm590_vm13, %v1292_v15, %v1294_v40 }
 0x823   : > { %v1300_v31 = vmax.f32 %v1286_v26, %v1296_v21 }
 0x827   : > { %v1318_v17 = vpop.permute.xlu2 %1317 }
 0x829   : > { %v1306_v19 = vpop.permute.xlu0 %1305 }
 0x82a   : > { %v1308_v47 = vsel %vm525_vm12, %v1304_v18, %v1306_v19 }
 0x82b   : > { %v1312_v28 = vsel %vm2188_vm3, %v1308_v47, -inf }
 0x82c   : > { %v1314_v33 = vmax.f32 %v1300_v31, %v1312_v28 }
 0x82f   : > { %v1290_v23 = vpop.permute.xlu1 %1289  ;;  %v1332_v55 = vpop.permute.xlu2 %1331 }
 0x830   : > { %v1295_v43 = vsel %vm590_vm13, %v1290_v23, %v1292_v15  ;;  %v2036_v23 = vld [vmem:[%s2391_s16] sm:$0xff] }
 0x831   : > { %v1320_v12 = vpop.permute.xlu0 %1319  ;;  %v1299_v57 = vmax.f32 %v1285_v54, %v1295_v43 }
 0x832   : > { %v1322_v38 = vsel %vm538_vm11, %v1318_v17, %v1320_v12 }
 0x833   : > { %v1326_v3 = vsel %vm2211_vm8, %v1322_v38, -inf }
 0x834   : > { %v1328_v8 = vmax.f32 %v1314_v33, %v1326_v3 }
 0x837   : > { %v1302_v63 = vpop.permute.xlu1 %1301  ;;  %v1346_v4 = vpop.permute.xlu2 %1345 }
 0x838   : > { %v1307_v50 = vsel %vm525_vm12, %v1302_v63, %v1304_v18  ;;  %v1702_v63 = vpop.f32.mrf.mxu3 }
 0x839   : > { %v1334_v0 = vpop.permute.xlu0 %1333  ;;  %v1311_v13 = vsel %vm2195_vm4, %v1307_v50, -inf }
 0x83a   : > { %v1336_v32 = vsel %vm551_vm9, %v1332_v55, %v1334_v0  ;;  %v1313_v24 = vmax.f32 %v1299_v57, %v1311_v13 }
 0x83b   : > { %v1340_v22 = vsel %vm2188_vm3, %v1336_v32, -inf }
 0x83c   : > { %v1342_v2 = vmax.f32 %v1328_v8, %v1340_v22 }
 0x83f   : > { %v1316_v61 = vpop.permute.xlu1 %1315  ;;  %v1360_v30 = vpop.permute.xlu2 %1359 }
 0x840   : > { %v1321_v49 = vsel %vm538_vm11, %v1316_v61, %v1318_v17 }
 0x841   : > { %v1348_v7 = vpop.permute.xlu0 %1347  ;;  %v1325_v62 = vsel %vm2204_vm7, %v1321_v49, -inf }
 0x842   : > { %v1350_v34 = vsel %vm564_vm6, %v1346_v4, %v1348_v7  ;;  %v1327_v1 = vmax.f32 %v1313_v24, %v1325_v62 }
 0x843   : > { %v1354_v35 = vsel %vm2211_vm8, %v1350_v34, -inf }
 0x844   : > { %v1356_v41 = vmax.f32 %v1342_v2, %v1354_v35 }
 0x847   : > { %v1330_v20 = vpop.permute.xlu1 %1329  ;;  %v1372_v46 = vpop.permute.xlu2 %1371 }
 0x848   : > { %v1335_v58 = vsel %vm551_vm9, %v1330_v20, %v1332_v55  ;;  %v1682_v55 = vpop.f32.mrf.mxu2 }
 0x849   : > { %v1362_v25 = vpop.permute.xlu0 %1361  ;;  %v1339_v16 = vsel %vm2195_vm4, %v1335_v58, -inf }
 0x84a   : > { %v1364_v37 = vsel %vm612_vm5, %v1360_v30, %v1362_v25  ;;  %v1341_v6 = vmax.f32 %v1327_v1, %v1339_v16 }
 0x84b   : > { %v1368_v51 = vmax.f32 %v1356_v41, %v1364_v37 }
 0x84f   : > { %v1344_v36 = vpop.permute.xlu1 %1343 }
 0x850   : > { %v1349_v27 = vsel %vm564_vm6, %v1344_v36, %v1346_v4 }
 0x851   : > { %v1374_v48 = vpop.permute.xlu0 %1373  ;;  %v1353_v5 = vsel %vm2204_vm7, %v1349_v27, -inf }
 0x852   : > { %v1376_v52 = vsel %vm577_vm2, %v1372_v46, %v1374_v48  ;;  %v1355_v11 = vmax.f32 %v1341_v6, %v1353_v5 }
 0x853   : > { %v1380_v53 = vsel %vm2188_vm3, %v1376_v52, -inf }
 0x854   : > { %v1382_v56 = vmax.f32 %v1368_v51, %v1380_v53 }
 0x856   : > { %v1384_v60 = vadd.f32 %v2035_v59, %v1382_v56 }
 0x857   : > { %v1358_v9 = vpop.permute.xlu1 %1357 }
 0x858   : > { %1897 = vst [vmem:[%s2391_s16 + $0x28] sm:$0xff] %v1384_v60  ;;  %v1363_v10 = vsel %vm612_vm5, %v1358_v9, %v1360_v30 }
 0x859   : > { %v1367_v18 = vmax.f32 %v1355_v11, %v1363_v10 }
 0x85f   : > { %v1370_v15 = vpop.permute.xlu1 %1369 }
 0x860   : > { %v1375_v40 = vsel %vm577_vm2, %v1370_v15, %v1372_v46 }
 0x861   : > { %v1379_v17 = vsel %vm2195_vm4, %v1375_v40, -inf }
 0x862   : > { %v1381_v19 = vmax.f32 %v1367_v18, %v1379_v17 }
 0x864   : > { %v1383_v12 = vadd.f32 %v2036_v23, %v1381_v19 }
 0x866   : > { %1896 = vst [vmem:[%s2391_s16 + $0x20] sm:$0xff] %v1383_v12 }
 0x867   : > { %v1660_v39 = vpop.permute.xlu1 %1659 }
 0x868   : > { %v1683_v0 = vadd.f32 %v1682_v55, %v1660_v39  ;;  %v1703_v4 = vadd.f32 %v1702_v63, %v1660_v39 }
 0x86a   : > { %v1705_v61 = vadd.f32 %v1683_v0, %v2926_v42  ;;  %v1706_v7 = vadd.f32 %v1703_v4, %v2966_v14 }
 0x86c   : > { %1898 = vst [vmem:[%s2391_s16 + $0x30] sm:$0xff] %v1705_v61 }
 0x86d   : > { %1899 = vst [vmem:[%s2391_s16 + $0x38] sm:$0xff] %v1706_v7 }
 0x86e PF: > { %s20_s13 = sadd.s32 1, %s2043_s13  }
 0x86f   : > { %p17_p4 = scmp.ge.s32.totalorder %s20_s13, 4  }
 0x871   :  { %19 = sbr.rel (!%p17_p4) target bundleno = 1 (0x1), region = 106 }

</bundles_post_ra>
